<compile_context>
chip_gen: v7x
topology: tpu7x:2x2x1
jax: 0.10.0
libtpu: 0.0.40
codegen_flags: <defaults>
</compile_context>

<pallas_src>
import functools

import jax
import jax.numpy as jnp
from jax.experimental import pallas as pl
from jax.experimental.pallas import tpu as pltpu


def _round_up(a: int, m: int) -> int:
    return -(-a // m) * m


def _pick_nb(n: int, lhp: int) -> int:
    """Batch elements per grid step: widen the matmul lane dim toward ~512+
    while keeping >= 2 grid steps so both v7x TensorCores get work."""
    cap = max(1, n // 2)
    want = max(1, -(-512 // lhp))
    nb = 1
    for d in range(1, n + 1):
        if n % d == 0 and d <= cap and d <= want:
            nb = d
    return nb


def _build_im2col(x_ref, col_ref, *, offsets, nb, lhp, c):
    # On-chip im2col: one contiguous (C, LHp) copy per (batch, tap).  Tap
    # offsets are not multiples of 128, so the cross-lane relayout cost is paid
    # here exactly once, hoisted out of the MXU issue stream.
    for bi in range(nb):
        base = bi * lhp
        for t, s in enumerate(offsets):
            col_ref[t * c:(t + 1) * c, base:base + lhp] = x_ref[bi, :, s:s + lhp]


def _conv_upsample_kernel(x_ref, w_ref, b_ref, r_ref, o_ref, col_ref, *,
                          offsets, nb, lhp, c):
    # x_ref:   (Nb, C, Lp)        flattened zero-padded row-major images
    # w_ref:   (OC, KH*KW*C)      stacked conv weights
    # b_ref:   (OC, 1)            bias (f32)
    # r_ref:   (LHp, LOutP)       0/1 nearest-upsample replication matrix (f32)
    # o_ref:   (Nb, OC, LOutP)    final upsampled activations (lane-dense)
    # col_ref: (KH*KW*C, Nb*LHp)  im2col scratch
    _build_im2col(x_ref, col_ref, offsets=offsets, nb=nb, lhp=lhp, c=c)
    # Single stacked-K conv matmul (K = KH*KW*C) + bias, f32 accumulation.
    acc = jnp.dot(w_ref[...], col_ref[...],
                  preferred_element_type=jnp.float32) + b_ref[...]
    rep = r_ref[...]
    for bi in range(nb):
        y = jnp.dot(acc[:, bi * lhp:(bi + 1) * lhp], rep,
                    preferred_element_type=jnp.float32)
        o_ref[bi] = y.astype(o_ref.dtype)


def _conv_only_kernel(x_ref, w_ref, b_ref, o_ref, col_ref, *,
                      offsets, nb, lhp, c):
    # Fallback for large feature maps: conv only, upsample done in the wrapper.
    _build_im2col(x_ref, col_ref, offsets=offsets, nb=nb, lhp=lhp, c=c)
    acc = jnp.dot(w_ref[...], col_ref[...],
                  preferred_element_type=jnp.float32) + b_ref[...]
    for bi in range(nb):
        o_ref[bi] = acc[:, bi * lhp:(bi + 1) * lhp].astype(o_ref.dtype)


@functools.partial(jax.jit, static_argnames=("padding", "scale",
                                             "compute_dtype", "fuse_upsample"))
def conv2d_with_sampling(x, w, b, *, padding: int, scale: int,
                         compute_dtype=jnp.float32, fuse_upsample=None):
    """x: (N, C, H, W), w: (OC, C, KH, KW), b: (OC,).  mode='nearest'."""
    N, C, H, W = x.shape
    OC, _, KH, KW = w.shape
    Hp, Wp = H + 2 * padding, W + 2 * padding
    Ho, Wo = Hp - KH + 1, Wp - KW + 1
    S = int(scale)
    K = KH * KW * C

    LHp = _round_up(Ho * Wp, 128)           # lane-dense conv length
    LOut = (Ho * S) * (Wo * S)              # final flat output length
    LOutP = _round_up(LOut, 128)            # lane-dense output length
    max_off = (KH - 1) * Wp + (KW - 1)
    # Every tap slice [s, s + LHp) must stay inside the flat input block; Lp is
    # sized (and the input explicitly tail-padded) to guarantee that.  Do NOT
    # shrink the input block's last dim to Hp*Wp: the tap slices would silently
    # read out-of-bounds VMEM (no runtime bounds check on TPU).
    Lp = _round_up(max_off + LHp, 128)
    assert Lp >= Hp * Wp and Lp >= max_off + LHp

    Nb = _pick_nb(N, LHp)

    if fuse_upsample is None:
        # R is O(feature_area^2); only fuse while it stays comfortably small.
        fuse_upsample = LHp * LOutP * 4 <= 12 * 1024 * 1024
    fuse_upsample = bool(fuse_upsample)

    cd = jnp.dtype(compute_dtype)
    out_dt = x.dtype

    # ---- wrapper-side prep (single pass over the small input) ----
    xp = jnp.pad(x, ((0, 0), (0, 0), (padding, padding), (padding, padding)))
    xflat = jnp.pad(xp.reshape(N, C, Hp * Wp),
                    ((0, 0), (0, 0), (0, Lp - Hp * Wp))).astype(cd)
    # Stacked weights: k = (kh*KW + kw)*C + c  ->  (OC, KH*KW*C)
    wst = jnp.transpose(w, (0, 2, 3, 1)).reshape(OC, K).astype(cd)
    bk = b.reshape(OC, 1).astype(jnp.float32)

    offsets = tuple(kh * Wp + kw for kh in range(KH) for kw in range(KW))

    cd_bytes, out_bytes = cd.itemsize, jnp.dtype(out_dt).itemsize
    lout_dim = LOutP if fuse_upsample else LHp
    vmem_needed = (2 * Nb * C * Lp * cd_bytes                 # x (double-buffered)
                   + 2 * OC * K * cd_bytes                    # weights
                   + 2 * OC * 4                               # bias
                   + (2 * LHp * LOutP * 4 if fuse_upsample else 0)  # R
                   + K * Nb * LHp * cd_bytes                  # im2col scratch
                   + 2 * Nb * OC * lout_dim * out_bytes)      # output
    vmem_limit = int(min(100 * 1024 * 1024,
                         max(32 * 1024 * 1024,
                             int(vmem_needed * 1.25) + (2 << 20))))

    cost = pl.CostEstimate(
        flops=(2 * N * OC * K * LHp
               + (2 * N * OC * LHp * LOutP if fuse_upsample else 0)),
        transcendentals=0,
        bytes_accessed=(N * C * Lp * cd_bytes + OC * K * cd_bytes + OC * 4
                        + (LHp * LOutP * 4 if fuse_upsample else 0)
                        + N * OC * lout_dim * out_bytes))

    common_in_specs = [
        pl.BlockSpec((Nb, C, Lp), lambda n: (n, 0, 0)),
        pl.BlockSpec((OC, K), lambda n: (0, 0)),
        pl.BlockSpec((OC, 1), lambda n: (0, 0)),
    ]
    compiler_params = pltpu.CompilerParams(
        dimension_semantics=("parallel",),     # shard grid over v7x's 2 TCs
        vmem_limit_bytes=vmem_limit)
    scratch = [pltpu.VMEM((K, Nb * LHp), cd)]
    grid = (N // Nb,)

    # TODO(synk): for large feature maps add an Ho-row-tile grid axis with a
    # (KH-1)-row halo (element-offset index_map) sized for v7x's 64 MiB VMEM,
    # and pipeline_mode=pl.Buffered(3) on the input spec if DMA gets exposed.

    if fuse_upsample:
        # 0/1 replication matrix: column q = (i*S+si)*(Wo*S) + j*S + sj selects
        # flat conv element p = i*Wp + j (also crops the j >= Wo garbage cols).
        q = jnp.arange(LOutP)
        i = (q // (Wo * S)) // S
        j = (q % (Wo * S)) // S
        p = i * Wp + j
        rep = ((p[None, :] == jnp.arange(LHp)[:, None]) &
               (q < LOut)[None, :]).astype(jnp.float32)

        kernel = functools.partial(_conv_upsample_kernel, offsets=offsets,
                                   nb=Nb, lhp=LHp, c=C)
        out_flat = pl.pallas_call(
            kernel,
            out_shape=jax.ShapeDtypeStruct((N, OC, LOutP), out_dt),
            grid_spec=pltpu.PrefetchScalarGridSpec(
                num_scalar_prefetch=0,
                grid=grid,
                in_specs=common_in_specs + [
                    pl.BlockSpec((LHp, LOutP), lambda n: (0, 0))],
                out_specs=pl.BlockSpec((Nb, OC, LOutP), lambda n: (n, 0, 0)),
                scratch_shapes=scratch),
            compiler_params=compiler_params,
            cost_estimate=cost,
        )(xflat, wst, bk, rep)
        if LOutP != LOut:
            out_flat = out_flat[:, :, :LOut]
        return out_flat.reshape(N, OC, Ho * S, Wo * S)

    # Fallback path: conv-only kernel, nearest upsample done in the wrapper.
    kernel = functools.partial(_conv_only_kernel, offsets=offsets,
                               nb=Nb, lhp=LHp, c=C)
    conv_flat = pl.pallas_call(
        kernel,
        out_shape=jax.ShapeDtypeStruct((N, OC, LHp), out_dt),
        grid_spec=pltpu.PrefetchScalarGridSpec(
            num_scalar_prefetch=0,
            grid=grid,
            in_specs=common_in_specs,
            out_specs=pl.BlockSpec((Nb, OC, LHp), lambda n: (n, 0, 0)),
            scratch_shapes=scratch),
        compiler_params=compiler_params,
        cost_estimate=cost,
    )(xflat, wst, bk)
    # conv_flat[n, oc, i*Wp + j] == conv[n, oc, i, j]; j >= Wo and the LHp tail
    # are garbage from the flattened-width trick -> cropped here.
    conv = conv_flat[:, :, :Ho * Wp].reshape(N, OC, Ho, Wp)[:, :, :, :Wo]
    up = jnp.broadcast_to(conv[:, :, :, None, :, None], (N, OC, Ho, S, Wo, S))
    return up.reshape(N, OC, Ho * S, Wo * S)


def _reference(x, w, b, *, padding: int, scale: int):
    a = jax.lax.conv_general_dilated(
        x, w, window_strides=(1, 1),
        padding=((padding, padding), (padding, padding)),
        dimension_numbers=("NCHW", "OIHW", "NCHW"),
        precision=jax.lax.Precision.HIGHEST,
    ) + b[None, :, None, None]
    a = jnp.repeat(a, scale, axis=2)
    return jnp.repeat(a, scale, axis=3)


if __name__ == "__main__":
    # module config: Conv2dWithSampling(in_channels=4, out_channels=8,
    #                                   kernel_size=3, padding=1,
    #                                   scale_factor=2, mode='nearest')
    N, C, H, W = 2, 4, 16, 16
    OC, KH, KW = 8, 3, 3
    padding, scale = 1, 2

    key = jax.random.PRNGKey(0)
    kx, kw_, kb = jax.random.split(key, 3)
    x = jax.random.normal(kx, (N, C, H, W), dtype=jnp.float32)
    w = jax.random.normal(kw_, (OC, C, KH, KW), dtype=jnp.float32) * 0.1
    b = jax.random.normal(kb, (OC,), dtype=jnp.float32) * 0.1

    y_ref = _reference(x, w, b, padding=padding, scale=scale)

    # 1) f32 feeds, fused nearest-upsample epilogue (default path).
    y = jax.block_until_ready(
        conv2d_with_sampling(x, w, b, padding=padding, scale=scale))
    assert y.shape == (N, OC, H * scale, W * scale), y.shape
    assert jnp.allclose(y, y_ref, rtol=1e-3, atol=1e-3), float(
        jnp.max(jnp.abs(y - y_ref)))

    # 2) f32 feeds, conv-only kernel + wrapper upsample (large-feature-map path).
    y2 = jax.block_until_ready(
        conv2d_with_sampling(x, w, b, padding=padding, scale=scale,
                             fuse_upsample=False))
    assert jnp.allclose(y2, y_ref, rtol=1e-3, atol=1e-3), float(
        jnp.max(jnp.abs(y2 - y_ref)))

    # 3) bf16 MXU feeds (f32 accumulation); compared vs bf16-quantized reference.
    yb = jax.block_until_ready(
        conv2d_with_sampling(x, w, b, padding=padding, scale=scale,
                             compute_dtype=jnp.bfloat16))
    xq = x.astype(jnp.bfloat16).astype(jnp.float32)
    wq = w.astype(jnp.bfloat16).astype(jnp.float32)
    y_ref_q = _reference(xq, wq, b, padding=padding, scale=scale)
    assert jnp.allclose(yb, y_ref_q, rtol=2e-2, atol=2e-2), float(
        jnp.max(jnp.abs(yb - y_ref_q)))

    print("KERNEL_OK")
</pallas_src>

<mosaic_0001>
module attributes {stable_mosaic.version = 11 : i64} {
  func.func @_conv_upsample_kernel(%arg0: i32, %arg1: memref<1x4x512xf32, #tpu.memory_space<vmem>>, %arg2: memref<8x36xf32, #tpu.memory_space<vmem>>, %arg3: memref<8x1xf32, #tpu.memory_space<vmem>>, %arg4: memref<384x1024xf32, #tpu.memory_space<vmem>>, %arg5: memref<1x8x1024xf32, #tpu.memory_space<vmem>>, %arg6: memref<36x384xf32, #tpu.memory_space<vmem>>) attributes {dimension_semantics = [#tpu.dimension_semantics<parallel>], iteration_bounds = array<i64: 2>, scalar_prefetch = 0 : i64, scratch_operands = 1 : i64, tpu.core_type = #tpu.core_type<tc>, window_params = [{transform_indices = @transform_0, window_bounds = array<i64: 1, 4, 512>}, {pipeline_mode = #tpu.pipeline_mode<synchronous>, transform_indices = @transform_1, window_bounds = array<i64: 8, 36>}, {pipeline_mode = #tpu.pipeline_mode<synchronous>, transform_indices = @transform_2, window_bounds = array<i64: 8, 1>}, {pipeline_mode = #tpu.pipeline_mode<synchronous>, transform_indices = @transform_3, window_bounds = array<i64: 384, 1024>}, {transform_indices = @transform_4, window_bounds = array<i64: 1, 8, 1024>}]} {
    %c0 = arith.constant 0 : index
    %c0_0 = arith.constant 0 : index
    %c0_1 = arith.constant 0 : index
    %0 = vector.load %arg1[%c0, %c0_0, %c0_1] : memref<1x4x512xf32, #tpu.memory_space<vmem>>, vector<1x4x384xf32>
    %1 = vector.shape_cast %0 : vector<1x4x384xf32> to vector<4x384xf32>
    %c0_2 = arith.constant 0 : index
    %c0_3 = arith.constant 0 : index
    %2 = vector.load %arg6[%c0_2, %c0_3] : memref<36x384xf32, #tpu.memory_space<vmem>>, vector<4x384xf32>
    tpu.vector_store %arg6[%c0_2, %c0_3], %1 {strides = array<i32>} : memref<36x384xf32, #tpu.memory_space<vmem>>, vector<4x384xf32>,
    %c0_4 = arith.constant 0 : index
    %c0_5 = arith.constant 0 : index
    %c1 = arith.constant 1 : index
    %3 = vector.load %arg1[%c0_4, %c0_5, %c1] : memref<1x4x512xf32, #tpu.memory_space<vmem>>, vector<1x4x384xf32>
    %4 = vector.shape_cast %3 : vector<1x4x384xf32> to vector<4x384xf32>
    %c4 = arith.constant 4 : index
    %c0_6 = arith.constant 0 : index
    %5 = vector.load %arg6[%c4, %c0_6] : memref<36x384xf32, #tpu.memory_space<vmem>>, vector<4x384xf32>
    tpu.vector_store %arg6[%c4, %c0_6], %4 {strides = array<i32>} : memref<36x384xf32, #tpu.memory_space<vmem>>, vector<4x384xf32>,
    %c0_7 = arith.constant 0 : index
    %c0_8 = arith.constant 0 : index
    %c2 = arith.constant 2 : index
    %6 = vector.load %arg1[%c0_7, %c0_8, %c2] : memref<1x4x512xf32, #tpu.memory_space<vmem>>, vector<1x4x384xf32>
    %7 = vector.shape_cast %6 : vector<1x4x384xf32> to vector<4x384xf32>
    %c8 = arith.constant 8 : index
    %c0_9 = arith.constant 0 : index
    %8 = vector.load %arg6[%c8, %c0_9] : memref<36x384xf32, #tpu.memory_space<vmem>>, vector<4x384xf32>
    tpu.vector_store %arg6[%c8, %c0_9], %7 {strides = array<i32>} : memref<36x384xf32, #tpu.memory_space<vmem>>, vector<4x384xf32>,
    %c0_10 = arith.constant 0 : index
    %c0_11 = arith.constant 0 : index
    %c18 = arith.constant 18 : index
    %9 = vector.load %arg1[%c0_10, %c0_11, %c18] : memref<1x4x512xf32, #tpu.memory_space<vmem>>, vector<1x4x384xf32>
    %10 = vector.shape_cast %9 : vector<1x4x384xf32> to vector<4x384xf32>
    %c12 = arith.constant 12 : index
    %c0_12 = arith.constant 0 : index
    %11 = vector.load %arg6[%c12, %c0_12] : memref<36x384xf32, #tpu.memory_space<vmem>>, vector<4x384xf32>
    tpu.vector_store %arg6[%c12, %c0_12], %10 {strides = array<i32>} : memref<36x384xf32, #tpu.memory_space<vmem>>, vector<4x384xf32>,
    %c0_13 = arith.constant 0 : index
    %c0_14 = arith.constant 0 : index
    %c19 = arith.constant 19 : index
    %12 = vector.load %arg1[%c0_13, %c0_14, %c19] : memref<1x4x512xf32, #tpu.memory_space<vmem>>, vector<1x4x384xf32>
    %13 = vector.shape_cast %12 : vector<1x4x384xf32> to vector<4x384xf32>
    %c16 = arith.constant 16 : index
    %c0_15 = arith.constant 0 : index
    %14 = vector.load %arg6[%c16, %c0_15] : memref<36x384xf32, #tpu.memory_space<vmem>>, vector<4x384xf32>
    tpu.vector_store %arg6[%c16, %c0_15], %13 {strides = array<i32>} : memref<36x384xf32, #tpu.memory_space<vmem>>, vector<4x384xf32>,
    %c0_16 = arith.constant 0 : index
    %c0_17 = arith.constant 0 : index
    %c20 = arith.constant 20 : index
    %15 = vector.load %arg1[%c0_16, %c0_17, %c20] : memref<1x4x512xf32, #tpu.memory_space<vmem>>, vector<1x4x384xf32>
    %16 = vector.shape_cast %15 : vector<1x4x384xf32> to vector<4x384xf32>
    %c20_18 = arith.constant 20 : index
    %c0_19 = arith.constant 0 : index
    %17 = vector.load %arg6[%c20_18, %c0_19] : memref<36x384xf32, #tpu.memory_space<vmem>>, vector<4x384xf32>
    tpu.vector_store %arg6[%c20_18, %c0_19], %16 {strides = array<i32>} : memref<36x384xf32, #tpu.memory_space<vmem>>, vector<4x384xf32>,
    %c0_20 = arith.constant 0 : index
    %c0_21 = arith.constant 0 : index
    %c36 = arith.constant 36 : index
    %18 = vector.load %arg1[%c0_20, %c0_21, %c36] : memref<1x4x512xf32, #tpu.memory_space<vmem>>, vector<1x4x384xf32>
    %19 = vector.shape_cast %18 : vector<1x4x384xf32> to vector<4x384xf32>
    %c24 = arith.constant 24 : index
    %c0_22 = arith.constant 0 : index
    %20 = vector.load %arg6[%c24, %c0_22] : memref<36x384xf32, #tpu.memory_space<vmem>>, vector<4x384xf32>
    tpu.vector_store %arg6[%c24, %c0_22], %19 {strides = array<i32>} : memref<36x384xf32, #tpu.memory_space<vmem>>, vector<4x384xf32>,
    %c0_23 = arith.constant 0 : index
    %c0_24 = arith.constant 0 : index
    %c37 = arith.constant 37 : index
    %21 = vector.load %arg1[%c0_23, %c0_24, %c37] : memref<1x4x512xf32, #tpu.memory_space<vmem>>, vector<1x4x384xf32>
    %22 = vector.shape_cast %21 : vector<1x4x384xf32> to vector<4x384xf32>
    %c28 = arith.constant 28 : index
    %c0_25 = arith.constant 0 : index
    %23 = vector.load %arg6[%c28, %c0_25] : memref<36x384xf32, #tpu.memory_space<vmem>>, vector<4x384xf32>
    tpu.vector_store %arg6[%c28, %c0_25], %22 {strides = array<i32>} : memref<36x384xf32, #tpu.memory_space<vmem>>, vector<4x384xf32>,
    %c0_26 = arith.constant 0 : index
    %c0_27 = arith.constant 0 : index
    %c38 = arith.constant 38 : index
    %24 = vector.load %arg1[%c0_26, %c0_27, %c38] : memref<1x4x512xf32, #tpu.memory_space<vmem>>, vector<1x4x384xf32>
    %25 = vector.shape_cast %24 : vector<1x4x384xf32> to vector<4x384xf32>
    %c32 = arith.constant 32 : index
    %c0_28 = arith.constant 0 : index
    %26 = vector.load %arg6[%c32, %c0_28] : memref<36x384xf32, #tpu.memory_space<vmem>>, vector<4x384xf32>
    tpu.vector_store %arg6[%c32, %c0_28], %25 {strides = array<i32>} : memref<36x384xf32, #tpu.memory_space<vmem>>, vector<4x384xf32>,
    %c0_29 = arith.constant 0 : index
    %c0_30 = arith.constant 0 : index
    %27 = vector.load %arg2[%c0_29, %c0_30] : memref<8x36xf32, #tpu.memory_space<vmem>>, vector<8x36xf32>
    %c0_31 = arith.constant 0 : index
    %c0_32 = arith.constant 0 : index
    %28 = vector.load %arg6[%c0_31, %c0_32] : memref<36x384xf32, #tpu.memory_space<vmem>>, vector<36x384xf32>
    %cst = arith.constant dense<0.000000e+00> : vector<8x384xf32>
    %29 = tpu.matmul %27, %28, %cst {dimension_numbers = #tpu.dot_dimension_numbers<[1], [0], [0], [1], [0, 0, 1, 1], [], []>} : vector<8x36xf32>, vector<36x384xf32>, vector<8x384xf32> -> vector<8x384xf32>
    %c0_33 = arith.constant 0 : index
    %c0_34 = arith.constant 0 : index
    %30 = vector.load %arg3[%c0_33, %c0_34] : memref<8x1xf32, #tpu.memory_space<vmem>>, vector<8x1xf32>
    %31 = vector.broadcast %30 : vector<8x1xf32> to vector<8x384xf32>
    %32 = arith.addf %29, %31 : vector<8x384xf32>
    %c0_35 = arith.constant 0 : index
    %c0_36 = arith.constant 0 : index
    %33 = vector.load %arg4[%c0_35, %c0_36] : memref<384x1024xf32, #tpu.memory_space<vmem>>, vector<384x1024xf32>
    %cst_37 = arith.constant dense<0.000000e+00> : vector<8x1024xf32>
    %34 = tpu.matmul %32, %33, %cst_37 {dimension_numbers = #tpu.dot_dimension_numbers<[1], [0], [0], [1], [0, 0, 1, 1], [], []>} : vector<8x384xf32>, vector<384x1024xf32>, vector<8x1024xf32> -> vector<8x1024xf32>
    %c0_38 = arith.constant 0 : index
    %c0_39 = arith.constant 0 : index
    %c0_40 = arith.constant 0 : index
    %35 = vector.load %arg5[%c0_38, %c0_39, %c0_40] : memref<1x8x1024xf32, #tpu.memory_space<vmem>>, vector<1x8x1024xf32>
    %36 = vector.shape_cast %35 : vector<1x8x1024xf32> to vector<8x1024xf32>
    %37 = vector.shape_cast %34 : vector<8x1024xf32> to vector<1x8x1024xf32>
    tpu.vector_store %arg5[%c0_38, %c0_39, %c0_40], %37 {strides = array<i32>} : memref<1x8x1024xf32, #tpu.memory_space<vmem>>, vector<1x8x1024xf32>,
    return
  }
  func.func @transform_0(%arg0: i32) -> (i32, i32, i32) {
    %c0_i32 = arith.constant 0 : i32
    %c0_i32_0 = arith.constant 0 : i32
    %c0_i32_1 = arith.constant 0 : i32
    return %arg0, %c0_i32, %c0_i32_0 : i32, i32, i32
  }
  func.func @transform_1(%arg0: i32) -> (i32, i32) {
    %c0_i32 = arith.constant 0 : i32
    %c0_i32_0 = arith.constant 0 : i32
    %c0_i32_1 = arith.constant 0 : i32
    return %c0_i32, %c0_i32_0 : i32, i32
  }
  func.func @transform_2(%arg0: i32) -> (i32, i32) {
    %c0_i32 = arith.constant 0 : i32
    %c0_i32_0 = arith.constant 0 : i32
    %c0_i32_1 = arith.constant 0 : i32
    return %c0_i32, %c0_i32_0 : i32, i32
  }
  func.func @transform_3(%arg0: i32) -> (i32, i32) {
    %c0_i32 = arith.constant 0 : i32
    %c0_i32_0 = arith.constant 0 : i32
    %c0_i32_1 = arith.constant 0 : i32
    return %c0_i32, %c0_i32_0 : i32, i32
  }
  func.func @transform_4(%arg0: i32) -> (i32, i32, i32) {
    %c0_i32 = arith.constant 0 : i32
    %c0_i32_0 = arith.constant 0 : i32
    %c0_i32_1 = arith.constant 0 : i32
    return %arg0, %c0_i32, %c0_i32_0 : i32, i32, i32
  }
}

</mosaic_0001>

<bundles_post_ra>
// kernel: conv2d_with_sampling.1
= control target key start
LH: loop header
LB: loop body
LE: loop exit
PB: predicated region body
PF: predicated region fallthrough
CT: control target
= control target key end

     0   :  { %s2103_s15 = smov 0   ;;  %s3396_s0 = inlined_call_operand.vmem [shape: f32[2,4,512], index: 0, kind: input, shape index: {}]   ;;  %s3397_s1 = inlined_call_operand.vmem [shape: f32[8,36], index: 1, kind: input, shape index: {}]   ;;  %s3398_s2 = inlined_call_operand.vmem [shape: f32[8,1], index: 2, kind: input, shape index: {}]   ;;  %s3399_s3 = inlined_call_operand.vmem [shape: f32[384,1024], index: 3, kind: input, shape index: {}]   ;;  %s3400_s4 = inlined_call_operand.vmem [shape: f32[2,8,1024], index: 4, kind: output, shape index: {}]  }
   0x1 LB: > { %s1590_s16 = sadd.s32 4294967295, %s2064_s15   ;;  %p1594_p0 = scmp.ge.s32.totalorder %s2064_s15, 1  ;;  %s2064_s15 = sphi %s2103_s15, %s14_s15  }
   0x2   : > { %p162_p1 = scmp.lt.s32.totalorder %s2064_s15, 3 }
   0x4   : > { %p163_p2 = pnand %p1594_p0, %p162_p1 }
   0x5   : > { %p188_p3 = scmp.lt.s32.totalorder (!%p163_p2), %s1590_s16, 1  ;;  %s2066_s21 = smov (!%p163_p2), 126   ;;  %v2074_v6 = vmov (!%p163_p2), 0.0   ;;  %v2075_v8 = vmov (!%p163_p2), 0.0|0.0   ;;  %vm2076_vm0 = vmmov (!%p163_p2), 0   ;;  %v414_v9 = vld [vmem:[%s3398_s2] sm:$0xff] (!%p163_p2) }
   0x6   : > { %166 = sbr.rel (%p163_p2) target bundleno = 747 (0x2eb), region = 36  ;;  %s2067_s22 = smov (!%p163_p2), 127   ;;  %498 = vmatprep.mubr.f32.mxu0 (!%p163_p2), %v2074_v6  ;;  %1635 = vmatprep.subr.bf16.mxu1 (!%p163_p2), %v2075_v8  ;;  %v2077_v10 = vmov (!%p163_p2), 0   ;;  %vm244_vm1 = vcmask (!%p163_p2), 1031168   ;;  %vm268_vm2 = vcmask (!%p163_p2), 900096   ;;  %vm220_vm3 = vcmask (!%p163_p2), 1039360  }
   0x7   : > { %s2068_s23 = smov (!%p163_p2), 110   ;;  %s2069_s24 = smov (!%p163_p2), 109   ;;  %1624 = vmatprep.mubr.msk.f32.mxu1 (!%p163_p2), %vm2076_vm0, %v2074_v6  ;;  %2053 = vset.pattern.permute.xlu0 (!%p163_p2), %v2077_v10  ;;  %vm292_vm4 = vcmask (!%p163_p2), 891904   ;;  %vm316_vm5 = vcmask (!%p163_p2), 883712   ;;  %vm340_vm6 = vcmask (!%p163_p2), 752640   ;;  %vm364_vm7 = vcmask (!%p163_p2), 744448  }
   0x8   : > { %s2070_s25 = smov (!%p163_p2), 108   ;;  %s2071_s26 = smov (!%p163_p2), 92   ;;  %vm388_vm8 = vcmask (!%p163_p2), 736256   ;;  %vm424_vm9 = vcmask (!%p163_p2), 1043456   ;;  %vm420_vm10 = vcmask (!%p163_p2), 293888  }
   0x9   : > { %s2072_s27 = smov (!%p163_p2), 91   ;;  %s2073_s28 = smov (!%p163_p2), 90  }
   0xd   : > { %s3402_s16 = smov (!%p188_p3, %s1590_s16), 1 }
   0xe   : > { %s1606_s17 = sshll.u32 %s3402_s16, 4  ;;  %s1607_s7 = sshll.u32 %s3402_s16, 6 }
   0xf   : > { %s2117_s20 = scalar_lea.vmem %s3396_s0, %s1606_s17  ;;  %s197_s10 = scalar_lea.vmem %s3400_s4, %s1607_s7 }
  0x10   : > { %v231_v0 = vld [vmem:[%s2117_s20 + $0x8] sm:$0xff]  ;;  %v206_v1 = vld [vmem:[%s2117_s20] sm:$0xff] }
  0x11   : > { %240 = vrot.lane.b32.xlu1 %v231_v0, %s2066_s21  ;;  %214 = vrot.lane.b32.xlu0 %v206_v1, %s2067_s22  ;;  %v234_v2 = vcombine.high %v206_v1, %v206_v1  ;;  %203 = vst [vmem:[#allocation2] sm:$0xf] %v206_v1  ;;  %v259_v3 = vcombine.low %v231_v0, %v231_v0  ;;  %v199_v5 = vld [vmem:[%s2117_s20 + $0x8] sm:$0xf] }
  0x12   : > { %v210_v4 = vcombine.low %v206_v1, %v206_v1  ;;  %205 = vst [vmem:[#allocation2 + $0x10] sm:$0xf] %v199_v5  ;;  %v235_v7 = vcombine.high %v231_v0, %v231_v0  ;;  %v575_v5 = vld [vmem:[%s3399_s3] sm:$0xff] }
  0x13   : > { %204 = vst [vmem:[#allocation2 + $0x8] sm:$0xf] %v234_v2 }
  0x15   : > { %238 = vrot.lane.b32.xlu1 %v234_v2, %s2066_s21  ;;  %262 = vrot.lane.b32.xlu0 %v206_v1, %s2068_s23 }
  0x19   : > { %264 = vrot.lane.b32.xlu1 %v259_v3, %s2068_s23  ;;  %216 = vrot.lane.b32.xlu0 %v259_v3, %s2067_s22 }
  0x1d   : > { %236 = vrot.lane.b32.xlu1 %v206_v1, %s2066_s21  ;;  %212 = vrot.lane.b32.xlu0 %v210_v4, %s2067_s22 }
  0x21   : > { %286 = vrot.lane.b32.xlu1 %v234_v2, %s2069_s24  ;;  %260 = vrot.lane.b32.xlu0 %v210_v4, %s2068_s23 }
  0x25   : > { %310 = vrot.lane.b32.xlu1 %v206_v1, %s2070_s25  ;;  %288 = vrot.lane.b32.xlu0 %v231_v0, %s2069_s24 }
  0x29   : > { %334 = vrot.lane.b32.xlu1 %v234_v2, %s2071_s26  ;;  %312 = vrot.lane.b32.xlu0 %v259_v3, %s2070_s25 }
  0x2d   : > { %358 = vrot.lane.b32.xlu1 %v206_v1, %s2072_s27  ;;  %336 = vrot.lane.b32.xlu0 %v231_v0, %s2071_s26 }
  0x31   : > { %284 = vrot.lane.b32.xlu1 %v206_v1, %s2069_s24  ;;  %360 = vrot.lane.b32.xlu0 %v259_v3, %s2072_s27  ;;  %v576_v3 = vld [vmem:[%s3399_s3 + $0x8] sm:$0xff] }
  0x35   : > { %332 = vrot.lane.b32.xlu1 %v206_v1, %s2071_s26  ;;  %308 = vrot.lane.b32.xlu0 %v210_v4, %s2070_s25 }
  0x39   : > { %382 = vrot.lane.b32.xlu1 %v234_v2, %s2073_s28  ;;  %356 = vrot.lane.b32.xlu0 %v210_v4, %s2072_s27  ;;  %v584_v4 = vld [vmem:[%s3399_s3 + $0x48] sm:$0xff] }
  0x3d   : > { %380 = vrot.lane.b32.xlu1 %v206_v1, %s2073_s28  ;;  %384 = vrot.lane.b32.xlu0 %v231_v0, %s2073_s28 }
  0x41   : > { %242 = vrot.lane.b32.xlu1 %v235_v7, %s2066_s21  ;;  %218 = vrot.lane.b32.xlu0 %v231_v0, %s2067_s22 }
  0x45   : > { %290 = vrot.lane.b32.xlu1 %v235_v7, %s2069_s24  ;;  %266 = vrot.lane.b32.xlu0 %v231_v0, %s2068_s23 }
  0x49   : > { %338 = vrot.lane.b32.xlu1 %v235_v7, %s2071_s26  ;;  %314 = vrot.lane.b32.xlu0 %v231_v0, %s2070_s25 }
  0x4d   : > { %386 = vrot.lane.b32.xlu1 %v235_v7, %s2073_s28  ;;  %362 = vrot.lane.b32.xlu0 %v231_v0, %s2072_s27  ;;  %v583_v7 = vld [vmem:[%s3399_s3 + $0x40] sm:$0xff] }
  0x51   : > { %417 = vperm.xlu0 %2053, %v414_v9  }
  0x83   : > { %v2144_v11 = vpop.permute.xlu1 %240  ;;  %v215_v12 = vpop.permute.xlu0 %214 }
  0x87   : > { %v239_v13 = vpop.permute.xlu1 %238  ;;  %v263_v14 = vpop.permute.xlu0 %262 }
  0x88   : > { %v246_v15 = vsel %vm244_vm1, %v239_v13, %v2144_v11 }
  0x89   : > { %252 = vst [vmem:[#allocation2 + $0x20] sm:$0xf] %v246_v15 }
  0x8b   : > { %v2148_v16 = vpop.permute.xlu1 %264  ;;  %v2150_v17 = vpop.permute.xlu0 %216 }
  0x8c   : > { %v270_v18 = vsel %vm268_vm2, %v263_v14, %v2148_v16  ;;  %v222_v19 = vsel %vm220_vm3, %v215_v12, %v2150_v17 }
  0x8d   : > { %276 = vst [vmem:[#allocation2 + $0x20] sm:$0xf0] %v270_v18  ;;  %228 = vst [vmem:[#allocation2 + $0x8] sm:$0xf0] %v222_v19  ;;  %v2211_v18 = vld [vmem:[%s3397_s1] sm:$0xff]  ;;  %v1643_v19 = vpack.c.bf16 %v583_v7, %v575_v5  ;;  %v593_v7 = vld [vmem:[%s3399_s3 + $0x90] sm:$0xff] }
  0x8f   : > { %v237_v20 = vpop.permute.xlu1 %236  ;;  %v213_v21 = vpop.permute.xlu0 %212 }
  0x90   : > { %v245_v22 = vsel %vm244_vm1, %v237_v20, %v239_v13  ;;  %v221_v23 = vsel %vm220_vm3, %v213_v21, %v215_v12  ;;  %v600_v12 = vld [vmem:[%s3399_s3 + $0xc8] sm:$0xff] }
  0x91   : > { %251 = vst [vmem:[#allocation2 + $0x18] sm:$0xf] %v245_v22  ;;  %227 = vst [vmem:[#allocation2] sm:$0xf0] %v221_v23  ;;  %v591_v22 = vld [vmem:[%s3399_s3 + $0x80] sm:$0xff] }
  0x93   : > { %v287_v24 = vpop.permute.xlu1 %286  ;;  %v261_v25 = vpop.permute.xlu0 %260 }
  0x94   : > { %v269_v26 = vsel %vm268_vm2, %v261_v25, %v263_v14  ;;  %v400_v27 = vld [vmem:[#allocation2 + $0x8] sm:$0xff]  ;;  %v403_v28 = vld [vmem:[#allocation2 + $0x20] sm:$0xff] }
  0x95   : > { %275 = vst [vmem:[#allocation2 + $0x18] sm:$0xf0] %v269_v26  ;;  %v1627_v29 = vpack.c.bf16 %v403_v28, %v400_v27  ;;  %v608_v25 = vld [vmem:[%s3399_s3 + $0x108] sm:$0xff] }
  0x96   : > { %v616_v26 = vld [vmem:[%s3399_s3 + $0x148] sm:$0xff] }
  0x97   : > { %v311_v30 = vpop.permute.xlu1 %310  ;;  %v2159_v31 = vpop.permute.xlu0 %288  ;;  %1628 = vmatprep.subr.bf16.mxu0 %v1627_v29 }
  0x98   : > { %v294_v32 = vsel %vm292_vm4, %v287_v24, %v2159_v31  ;;  %v399_v36 = vld [vmem:[#allocation2] sm:$0xff] }
  0x99   : > { %300 = vst [vmem:[#allocation2 + $0x38] sm:$0xf] %v294_v32  ;;  %v615_v32 = vld [vmem:[%s3399_s3 + $0x140] sm:$0xff] }
  0x9b   : > { %v335_v33 = vpop.permute.xlu1 %334  ;;  %v2163_v34 = vpop.permute.xlu0 %312 }
  0x9c   : > { %v318_v35 = vsel %vm316_vm5, %v311_v30, %v2163_v34  ;;  %v402_v37 = vld [vmem:[#allocation2 + $0x18] sm:$0xff] }
  0x9d   : > { %324 = vst [vmem:[#allocation2 + $0x38] sm:$0xf0] %v318_v35  ;;  %v1629_v38 = vpack.c.bf16 %v402_v37, %v399_v36  ;;  %v624_v35 = vld [vmem:[%s3399_s3 + $0x188] sm:$0xff] }
  0x9e   : > { %v632_v36 = vld [vmem:[%s3399_s3 + $0x1c8] sm:$0xff] }
  0x9f   : > { %v359_v39 = vpop.permute.xlu1 %358  ;;  %v2167_v40 = vpop.permute.xlu0 %336  ;;  %1630 = vmatpush1.bf16.msra.mxu0 %v1629_v38 }
  0xa0   : > { %v342_v41 = vsel %vm340_vm6, %v335_v33, %v2167_v40 }
  0xa1   : > { %348 = vst [vmem:[#allocation2 + $0x50] sm:$0xf] %v342_v41 }
  0xa3   : > { %v285_v42 = vpop.permute.xlu1 %284  ;;  %v2171_v43 = vpop.permute.xlu0 %360 }
  0xa4   : > { %v293_v44 = vsel %vm292_vm4, %v285_v42, %v287_v24  ;;  %v366_v45 = vsel %vm364_vm7, %v359_v39, %v2171_v43  ;;  %v406_v53 = vld [vmem:[#allocation2 + $0x38] sm:$0xff] }
  0xa5   : > { %299 = vst [vmem:[#allocation2 + $0x30] sm:$0xf] %v293_v44  ;;  %372 = vst [vmem:[#allocation2 + $0x50] sm:$0xf0] %v366_v45  ;;  %v1653_v44 = vpack.c.bf16 %v632_v36, %v624_v35  ;;  %v623_v45 = vld [vmem:[%s3399_s3 + $0x180] sm:$0xff] }
  0xa7   : > { %v333_v46 = vpop.permute.xlu1 %332  ;;  %v309_v47 = vpop.permute.xlu0 %308 }
  0xa8   : > { %v341_v48 = vsel %vm340_vm6, %v333_v46, %v335_v33  ;;  %v317_v49 = vsel %vm316_vm5, %v309_v47, %v311_v30  ;;  %v1649_v30 = vpack.c.bf16 %v616_v26, %v608_v25  ;;  %v631_v46 = vld [vmem:[%s3399_s3 + $0x1c0] sm:$0xff]  ;;  %v648_v47 = vld [vmem:[%s3399_s3 + $0x248] sm:$0xff]  ;;  %v626_v26 = vld [vmem:[%s3399_s3 + $0x198] sm:$0xff] }
  0xa9   : > { %347 = vst [vmem:[#allocation2 + $0x48] sm:$0xf] %v341_v48  ;;  %323 = vst [vmem:[#allocation2 + $0x30] sm:$0xf0] %v317_v49  ;;  %v1655_v48 = vpack.c.bf16 %v631_v46, %v623_v45  ;;  %v641_v46 = vld [vmem:[%s3399_s3 + $0x210] sm:$0xff] }
  0xab   : > { %v383_v50 = vpop.permute.xlu1 %382  ;;  %v357_v51 = vpop.permute.xlu0 %356 }
  0xac   : > { %v365_v52 = vsel %vm364_vm7, %v357_v51, %v359_v39  ;;  %v409_v54 = vld [vmem:[#allocation2 + $0x50] sm:$0xff]  ;;  %v647_v51 = vld [vmem:[%s3399_s3 + $0x240] sm:$0xff] }
  0xad   : > { %371 = vst [vmem:[#allocation2 + $0x48] sm:$0xf0] %v365_v52  ;;  %v1631_v55 = vpack.c.bf16 %v409_v54, %v406_v53  ;;  %v656_v52 = vld [vmem:[%s3399_s3 + $0x288] sm:$0xff] }
  0xaf   : > { %v381_v56 = vpop.permute.xlu1 %380  ;;  %v385_v57 = vpop.permute.xlu0 %384  ;;  %1632 = vmatprep.subr.bf16.mxu0 %v1631_v55  ;;  %v578_v55 = vld [vmem:[%s3399_s3 + $0x18] sm:$0xff] }
  0xb0   : > { %v389_v58 = vsel %vm388_vm8, %v381_v56, %v383_v50  ;;  %v390_v59 = vsel %vm388_vm8, %v383_v50, %v385_v57  ;;  %v405_v0 = vld [vmem:[#allocation2 + $0x30] sm:$0xff]  ;;  %v639_v50 = vld [vmem:[%s3399_s3 + $0x200] sm:$0xff] }
  0xb1   : > { %395 = vst [vmem:[#allocation2 + $0x60] sm:$0xf] %v389_v58  ;;  %396 = vst [vmem:[#allocation2 + $0x68] sm:$0xf] %v390_v59  ;;  %v577_v58 = vld [vmem:[%s3399_s3 + $0x10] sm:$0xff] }
  0xb2   : > { %v585_v59 = vld [vmem:[%s3399_s3 + $0x50] sm:$0xff] }
  0xb3   : > { %v243_v60 = vpop.permute.xlu1 %242  ;;  %v219_v61 = vpop.permute.xlu0 %218  ;;  %v1739_v5 = vpack.c.bf16 %v585_v59, %v577_v58 }
  0xb4   : > { %v247_v62 = vsel %vm244_vm1, %v2144_v11, %v243_v60  ;;  %v223_v63 = vsel %vm220_vm3, %v2150_v17, %v219_v61  ;;  %v408_v1 = vld [vmem:[#allocation2 + $0x48] sm:$0xff]  ;;  %v1641_v17 = vpack.c.bf16 %v584_v4, %v576_v3  ;;  %v1659_v60 = vpack.c.bf16 %v647_v51, %v639_v50  ;;  %v594_v61 = vld [vmem:[%s3399_s3 + $0x98] sm:$0xff]  ;;  %v719_v51 = vld [vmem:[%s3399_s3 + $0x480] sm:$0xff] }
  0xb5   : > { %253 = vst [vmem:[#allocation2 + $0x28] sm:$0xf] %v247_v62  ;;  %229 = vst [vmem:[#allocation2 + $0x10] sm:$0xf0] %v223_v63  ;;  %v1633_v2 = vpack.c.bf16 %v408_v1, %v405_v0  ;;  %v592_v11 = vld [vmem:[%s3399_s3 + $0x88] sm:$0xff]  ;;  %v655_v63 = vld [vmem:[%s3399_s3 + $0x280] sm:$0xff] }
  0xb6   : > { %v1645_v21 = vpack.c.bf16 %v600_v12, %v592_v11  ;;  %v663_v0 = vld [vmem:[%s3399_s3 + $0x2c0] sm:$0xff]  ;;  %v602_v1 = vld [vmem:[%s3399_s3 + $0xd8] sm:$0xff]  ;;  %v680_v3 = vld [vmem:[%s3399_s3 + $0x348] sm:$0xff] }
  0xb7   : > { %v291_v9 = vpop.permute.xlu1 %290  ;;  %v267_v10 = vpop.permute.xlu0 %266  ;;  %1634 = vmatpush1.bf16.msra.mxu0 %v1633_v2  ;;  %v672_v2 = vld [vmem:[%s3399_s3 + $0x308] sm:$0xff]  ;;  %v1663_v11 = vpack.c.bf16 %v663_v0, %v655_v63  ;;  %v743_v63 = vld [vmem:[%s3399_s3 + $0x540] sm:$0xff]  ;;  %v682_v0 = vld [vmem:[%s3399_s3 + $0x358] sm:$0xff] }
  0xb8   : > { %v295_v13 = vsel %vm292_vm4, %v2159_v31, %v291_v9  ;;  %v271_v14 = vsel %vm268_vm2, %v2148_v16, %v267_v10  ;;  %v412_v15 = vld [vmem:[#allocation2 + $0x68] sm:$0xf]  ;;  %v411_v20 = vld [vmem:[#allocation2 + $0x60] sm:$0xf]  ;;  %v601_v9 = vld [vmem:[%s3399_s3 + $0xd0] sm:$0xff] }
  0xb9   : > { %301 = vst [vmem:[#allocation2 + $0x40] sm:$0xf] %v295_v13  ;;  %277 = vst [vmem:[#allocation2 + $0x28] sm:$0xf0] %v271_v14  ;;  %1599 = vmatprep.subr.msk.mxu0 %vm424_vm9, %v412_v15  ;;  %v599_v16 = vld [vmem:[%s3399_s3 + $0xc0] sm:$0xff]  ;;  %v610_v10 = vld [vmem:[%s3399_s3 + $0x118] sm:$0xff]  ;;  %v1741_v13 = vpack.c.bf16 %v602_v1, %v594_v61  ;;  %v1665_v14 = vpack.c.bf16 %v680_v3, %v672_v2 }
  0xba   : > { %v1647_v29 = vpack.c.bf16 %v599_v16, %v591_v22  ;;  %v607_v31 = vld [vmem:[%s3399_s3 + $0x100] sm:$0xff]  ;;  %v1743_v22 = vpack.c.bf16 %v601_v9, %v593_v7  ;;  %v609_v16 = vld [vmem:[%s3399_s3 + $0x110] sm:$0xff]  ;;  %v752_v1 = vld [vmem:[%s3399_s3 + $0x588] sm:$0xff] }
  0xbb   : > { %v339_v23 = vpop.permute.xlu1 %338  ;;  %v315_v24 = vpop.permute.xlu0 %314  ;;  %1600 = vmatpush1.msk.msra.mxu0 %vm424_vm9, %v411_v20  ;;  %v1651_v42 = vpack.c.bf16 %v615_v32, %v607_v31  ;;  %v671_v15 = vld [vmem:[%s3399_s3 + $0x300] sm:$0xff]  ;;  %v688_v20 = vld [vmem:[%s3399_s3 + $0x388] sm:$0xff] }
  0xbc   : > { %v343_v27 = vsel %vm340_vm6, %v2167_v40, %v339_v23  ;;  %v319_v28 = vsel %vm316_vm5, %v2163_v34, %v315_v24  ;;  %1601 = vmatmul.mubr.msk.f32.vlgmr.msra.gmra.mrb[0].mxu0 %vm420_vm10, %v2211_v18  ;;  %1642 = vmatprep.subr.bf16.mxu0 %v1641_v17  ;;  %v401_v39 = vld [vmem:[#allocation2 + $0x10] sm:$0xff]  ;;  %v679_v17 = vld [vmem:[%s3399_s3 + $0x340] sm:$0xff]  ;;  %v712_v31 = vld [vmem:[%s3399_s3 + $0x448] sm:$0xff] }
  0xbd   : > { %349 = vst [vmem:[#allocation2 + $0x58] sm:$0xf] %v343_v27  ;;  %325 = vst [vmem:[#allocation2 + $0x40] sm:$0xf0] %v319_v28  ;;  %1644 = vmatpush1.bf16.msra.mxu0 %v1643_v19  ;;  %v618_v19 = vld [vmem:[%s3399_s3 + $0x158] sm:$0xff]  ;;  %v617_v23 = vld [vmem:[%s3399_s3 + $0x150] sm:$0xff]  ;;  %v1667_v24 = vpack.c.bf16 %v679_v17, %v671_v15 }
  0xbe   : > { %1646 = vmatprep.subr.bf16.mxu0 %v1645_v21  ;;  %v696_v21 = vld [vmem:[%s3399_s3 + $0x3c8] sm:$0xff]  ;;  %v1745_v25 = vpack.c.bf16 %v618_v19, %v610_v10  ;;  %v687_v27 = vld [vmem:[%s3399_s3 + $0x380] sm:$0xff]  ;;  %v1747_v32 = vpack.c.bf16 %v617_v23, %v609_v16  ;;  %v690_v10 = vld [vmem:[%s3399_s3 + $0x398] sm:$0xff] }
  0xbf   : > { %v387_v33 = vpop.permute.xlu1 %386  ;;  %v363_v34 = vpop.permute.xlu0 %362  ;;  %v695_v28 = vld [vmem:[%s3399_s3 + $0x3c0] sm:$0xff]  ;;  %v760_v2 = vld [vmem:[%s3399_s3 + $0x5c8] sm:$0xff]  ;;  %v706_v23 = vld [vmem:[%s3399_s3 + $0x418] sm:$0xff] }
  0xc0   : > { %v391_v37 = vsel %vm388_vm8, %v385_v57, %v387_v33  ;;  %v367_v38 = vsel %vm364_vm7, %v2171_v43, %v363_v34  ;;  %v404_v40 = vld [vmem:[#allocation2 + $0x28] sm:$0xff]  ;;  %v586_v57 = vld [vmem:[%s3399_s3 + $0x58] sm:$0xff]  ;;  %v625_v33 = vld [vmem:[%s3399_s3 + $0x190] sm:$0xff]  ;;  %v1671_v35 = vpack.c.bf16 %v695_v28, %v687_v27 }
  0xc1   : > { %397 = vst [vmem:[#allocation2 + $0x70] sm:$0xf] %v391_v37  ;;  %373 = vst [vmem:[#allocation2 + $0x58] sm:$0xf0] %v367_v38  ;;  %v1636_v41 = vpack.c.bf16 %v404_v40, %v401_v39  ;;  %1648 = vmatpush1.bf16.msra.mxu0 %v1647_v29  ;;  %v640_v43 = vld [vmem:[%s3399_s3 + $0x208] sm:$0xff]  ;;  %v1737_v4 = vpack.c.bf16 %v586_v57, %v578_v55  ;;  %v634_v29 = vld [vmem:[%s3399_s3 + $0x1d8] sm:$0xff] }
  0xc2   : > { %1650 = vmatprep.subr.bf16.mxu0 %v1649_v30  ;;  %v1657_v49 = vpack.c.bf16 %v648_v47, %v640_v43  ;;  %v704_v30 = vld [vmem:[%s3399_s3 + $0x408] sm:$0xff]  ;;  %v633_v34 = vld [vmem:[%s3399_s3 + $0x1d0] sm:$0xff]  ;;  %v1749_v36 = vpack.c.bf16 %v634_v29, %v626_v26  ;;  %v642_v37 = vld [vmem:[%s3399_s3 + $0x218] sm:$0xff] }
  0xc3   : > { %1637 = vmatpush3.bf16.msra.mxu1 %v1636_v41  ;;  %v1673_v38 = vpack.c.bf16 %v712_v31, %v704_v30  ;;  %v703_v39 = vld [vmem:[%s3399_s3 + $0x400] sm:$0xff]  ;;  %v650_v41 = vld [vmem:[%s3399_s3 + $0x258] sm:$0xff]  ;;  %v1751_v45 = vpack.c.bf16 %v633_v34, %v625_v33  ;;  %v649_v43 = vld [vmem:[%s3399_s3 + $0x250] sm:$0xff] }
  0xc4   : > { %1638 = vmatprep.subr.bf16.mxu1 %v2075_v8  ;;  %v664_v8 = vld [vmem:[%s3399_s3 + $0x2c8] sm:$0xff]  ;;  %v407_v53 = vld [vmem:[#allocation2 + $0x40] sm:$0xff]  ;;  %v1755_v55 = vpack.c.bf16 %v649_v43, %v641_v46  ;;  %v665_v57 = vld [vmem:[%s3399_s3 + $0x2d0] sm:$0xff] }
  0xc5   : > { %1652 = vmatpush1.bf16.msra.mxu0 %v1651_v42  ;;  %v1661_v62 = vpack.c.bf16 %v664_v8, %v656_v52  ;;  %v711_v40 = vld [vmem:[%s3399_s3 + $0x440] sm:$0xff]  ;;  %v720_v42 = vld [vmem:[%s3399_s3 + $0x488] sm:$0xff]  ;;  %v666_v8 = vld [vmem:[%s3399_s3 + $0x2d8] sm:$0xff] }
  0xc6   : > { %1654 = vmatprep.subr.bf16.mxu0 %v1653_v44  ;;  %v728_v44 = vld [vmem:[%s3399_s3 + $0x4c8] sm:$0xff]  ;;  %v1675_v47 = vpack.c.bf16 %v711_v40, %v703_v39  ;;  %v727_v52 = vld [vmem:[%s3399_s3 + $0x4c0] sm:$0xff]  ;;  %v705_v30 = vld [vmem:[%s3399_s3 + $0x410] sm:$0xff] }
  0xc7   : > { %v1677_v50 = vpack.c.bf16 %v728_v44, %v720_v42  ;;  %v1679_v58 = vpack.c.bf16 %v727_v52, %v719_v51  ;;  %v768_v15 = vld [vmem:[%s3399_s3 + $0x608] sm:$0xff]  ;;  %v775_v26 = vld [vmem:[%s3399_s3 + $0x640] sm:$0xff]  ;;  %v713_v31 = vld [vmem:[%s3399_s3 + $0x450] sm:$0xff] }
  0xc8   : > { %v410_v54 = vld [vmem:[#allocation2 + $0x58] sm:$0xff]  ;;  %v413_v12 = vld [vmem:[#allocation2 + $0x70] sm:$0xf]  ;;  %v776_v17 = vld [vmem:[%s3399_s3 + $0x648] sm:$0xff] }
  0xc9   : > { %v1639_v56 = vpack.c.bf16 %v410_v54, %v407_v53  ;;  %1656 = vmatpush1.bf16.msra.mxu0 %v1655_v48  ;;  %v1753_v48 = vpack.c.bf16 %v650_v41, %v642_v37  ;;  %v736_v53 = vld [vmem:[%s3399_s3 + $0x508] sm:$0xff]  ;;  %v722_v34 = vld [vmem:[%s3399_s3 + $0x498] sm:$0xff]  ;;  %v791_v37 = vld [vmem:[%s3399_s3 + $0x6c0] sm:$0xff]  ;;  %v1771_v41 = vpack.c.bf16 %v713_v31, %v705_v30 }
  0xca   : > { %1658 = vmatprep.subr.bf16.mxu0 %v1657_v49  ;;  %v658_v49 = vld [vmem:[%s3399_s3 + $0x298] sm:$0xff]  ;;  %v744_v54 = vld [vmem:[%s3399_s3 + $0x548] sm:$0xff]  ;;  %v721_v42 = vld [vmem:[%s3399_s3 + $0x490] sm:$0xff] }
  0xcb   : > { %1640 = vmatpush3.bf16.msra.mxu1 %v1639_v56  ;;  %v657_v56 = vld [vmem:[%s3399_s3 + $0x290] sm:$0xff]  ;;  %v1757_v59 = vpack.c.bf16 %v666_v8, %v658_v49  ;;  %v1681_v61 = vpack.c.bf16 %v744_v54, %v736_v53  ;;  %v784_v27 = vld [vmem:[%s3399_s3 + $0x688] sm:$0xff]  ;;  %v738_v49 = vld [vmem:[%s3399_s3 + $0x518] sm:$0xff] }
  0xcc   : > { %1622 = vmatprep.subr.mxu1 %v2074_v6  ;;  %v1759_v3 = vpack.c.bf16 %v665_v57, %v657_v56  ;;  %v792_v28 = vld [vmem:[%s3399_s3 + $0x6c8] sm:$0xff]  ;;  %v729_v46 = vld [vmem:[%s3399_s3 + $0x4d0] sm:$0xff]  ;;  %v762_v56 = vld [vmem:[%s3399_s3 + $0x5d8] sm:$0xff] }
  0xcd   : > { %1660 = vmatpush1.bf16.msra.mxu0 %v1659_v60  ;;  %v674_v60 = vld [vmem:[%s3399_s3 + $0x318] sm:$0xff]  ;;  %v800_v39 = vld [vmem:[%s3399_s3 + $0x708] sm:$0xff]  ;;  %v1775_v51 = vpack.c.bf16 %v729_v46, %v721_v42  ;;  %v737_v53 = vld [vmem:[%s3399_s3 + $0x510] sm:$0xff] }
  0xce   : > { %1662 = vmatprep.subr.bf16.mxu0 %v1661_v62  ;;  %v735_v62 = vld [vmem:[%s3399_s3 + $0x500] sm:$0xff]  ;;  %v1761_v9 = vpack.c.bf16 %v682_v0, %v674_v60  ;;  %v808_v40 = vld [vmem:[%s3399_s3 + $0x748] sm:$0xff]  ;;  %v745_v54 = vld [vmem:[%s3399_s3 + $0x550] sm:$0xff] }
  0xcf   : > { %1623 = vmatpush3.msk.msra.mxu1 %vm424_vm9, %v413_v12  ;;  %v1683_v7 = vpack.c.bf16 %v743_v63, %v735_v62  ;;  %v751_v12 = vld [vmem:[%s3399_s3 + $0x580] sm:$0xff]  ;;  %v1697_v43 = vpack.c.bf16 %v808_v40, %v800_v39  ;;  %v1779_v57 = vpack.c.bf16 %v745_v54, %v737_v53  ;;  %v761_v60 = vld [vmem:[%s3399_s3 + $0x5d0] sm:$0xff]  ;;  %v778_v62 = vld [vmem:[%s3399_s3 + $0x658] sm:$0xff] }
  0xd0   : > { %1625 = vmatmul.mubr.msk.f32.vlgmr.msra.gmra.mrb[0].mxu1 %vm420_vm10, %v2211_v18  ;;  %1738 = vmatprep.subr.bf16.mxu1 %v1737_v4  ;;  %v1669_v18 = vpack.c.bf16 %v696_v21, %v688_v20  ;;  %v673_v4 = vld [vmem:[%s3399_s3 + $0x310] sm:$0xff]  ;;  %v832_v30 = vld [vmem:[%s3399_s3 + $0x808] sm:$0xff]  ;;  %v858_v46 = vld [vmem:[%s3399_s3 + $0x8d8] sm:$0xff] }
  0xd1   : > { %1740 = vmatpush1.bf16.msra.mxu1 %v1739_v5  ;;  %1664 = vmatpush1.bf16.msra.mxu0 %v1663_v11  ;;  %v681_v5 = vld [vmem:[%s3399_s3 + $0x350] sm:$0xff]  ;;  %v1685_v11 = vpack.c.bf16 %v760_v2, %v752_v1  ;;  %v840_v31 = vld [vmem:[%s3399_s3 + $0x848] sm:$0xff] }
  0xd2   : > { %1742 = vmatprep.subr.bf16.mxu1 %v1741_v13  ;;  %1666 = vmatprep.subr.bf16.mxu0 %v1665_v14  ;;  %v759_v13 = vld [vmem:[%s3399_s3 + $0x5c0] sm:$0xff]  ;;  %v698_v14 = vld [vmem:[%s3399_s3 + $0x3d8] sm:$0xff]  ;;  %v1763_v19 = vpack.c.bf16 %v681_v5, %v673_v4  ;;  %v689_v20 = vld [vmem:[%s3399_s3 + $0x390] sm:$0xff] }
  0xd3   : > { %v697_v21 = vld [vmem:[%s3399_s3 + $0x3d0] sm:$0xff]  ;;  %v1765_v16 = vpack.c.bf16 %v698_v14, %v690_v10  ;;  %v794_v4 = vld [vmem:[%s3399_s3 + $0x6d8] sm:$0xff] }
  0xd4   : > { %v1767_v29 = vpack.c.bf16 %v697_v21, %v689_v20  ;;  %v769_v1 = vld [vmem:[%s3399_s3 + $0x610] sm:$0xff]  ;;  %v816_v20 = vld [vmem:[%s3399_s3 + $0x788] sm:$0xff] }
  0xd5   : > { %1744 = vmatpush1.bf16.msra.mxu1 %v1743_v22  ;;  %1668 = vmatpush1.bf16.msra.mxu0 %v1667_v24  ;;  %v1687_v22 = vpack.c.bf16 %v759_v13, %v751_v12  ;;  %v1689_v24 = vpack.c.bf16 %v776_v17, %v768_v15  ;;  %v777_v2 = vld [vmem:[%s3399_s3 + $0x650] sm:$0xff]  ;;  %v810_v12 = vld [vmem:[%s3399_s3 + $0x758] sm:$0xff]  ;;  %v824_v21 = vld [vmem:[%s3399_s3 + $0x7c8] sm:$0xff] }
  0xd6   : > { %1746 = vmatprep.subr.bf16.mxu1 %v1745_v25  ;;  %1670 = vmatprep.subr.bf16.mxu0 %v1669_v18  ;;  %v767_v25 = vld [vmem:[%s3399_s3 + $0x600] sm:$0xff]  ;;  %v714_v18 = vld [vmem:[%s3399_s3 + $0x458] sm:$0xff]  ;;  %v1787_v5 = vpack.c.bf16 %v777_v2, %v769_v1  ;;  %v793_v10 = vld [vmem:[%s3399_s3 + $0x6d0] sm:$0xff] }
  0xd7   : > { %v1769_v33 = vpack.c.bf16 %v714_v18, %v706_v23  ;;  %v801_v15 = vld [vmem:[%s3399_s3 + $0x710] sm:$0xff]  ;;  %v826_v23 = vld [vmem:[%s3399_s3 + $0x7d8] sm:$0xff] }
  0xd8   : > { %v809_v17 = vld [vmem:[%s3399_s3 + $0x750] sm:$0xff] }
  0xd9   : > { %1748 = vmatpush1.bf16.msra.mxu1 %v1747_v32  ;;  %1672 = vmatpush1.bf16.msra.mxu0 %v1671_v35  ;;  %v1691_v32 = vpack.c.bf16 %v775_v26, %v767_v25  ;;  %v1693_v35 = vpack.c.bf16 %v792_v28, %v784_v27  ;;  %v823_v25 = vld [vmem:[%s3399_s3 + $0x7c0] sm:$0xff]  ;;  %v817_v27 = vld [vmem:[%s3399_s3 + $0x790] sm:$0xff] }
  0xda   : > { %1750 = vmatprep.subr.bf16.mxu1 %v1749_v36  ;;  %1674 = vmatprep.subr.bf16.mxu0 %v1673_v38  ;;  %v783_v36 = vld [vmem:[%s3399_s3 + $0x680] sm:$0xff]  ;;  %v730_v38 = vld [vmem:[%s3399_s3 + $0x4d8] sm:$0xff]  ;;  %v825_v28 = vld [vmem:[%s3399_s3 + $0x7d0] sm:$0xff] }
  0xdb   : > { %v1695_v44 = vpack.c.bf16 %v791_v37, %v783_v36  ;;  %v831_v36 = vld [vmem:[%s3399_s3 + $0x800] sm:$0xff]  ;;  %v833_v39 = vld [vmem:[%s3399_s3 + $0x810] sm:$0xff] }
  0xdc   : > { %v839_v37 = vld [vmem:[%s3399_s3 + $0x840] sm:$0xff]  ;;  %v841_v40 = vld [vmem:[%s3399_s3 + $0x850] sm:$0xff] }
  0xdd   : > { %1752 = vmatpush1.bf16.msra.mxu1 %v1751_v45  ;;  %1676 = vmatpush1.bf16.msra.mxu0 %v1675_v47  ;;  %v1773_v45 = vpack.c.bf16 %v730_v38, %v722_v34  ;;  %v799_v47 = vld [vmem:[%s3399_s3 + $0x700] sm:$0xff]  ;;  %v842_v34 = vld [vmem:[%s3399_s3 + $0x858] sm:$0xff]  ;;  %v2612_v38 = vpop.permute.xlu0 %417  ;;  %v849_v54 = vld [vmem:[%s3399_s3 + $0x890] sm:$0xff] }
  0xde   : > { %1754 = vmatprep.subr.bf16.mxu1 %v1753_v48  ;;  %1678 = vmatprep.subr.bf16.mxu0 %v1677_v50  ;;  %v807_v48 = vld [vmem:[%s3399_s3 + $0x740] sm:$0xff]  ;;  %v746_v50 = vld [vmem:[%s3399_s3 + $0x558] sm:$0xff]  ;;  %v865_v2 = vld [vmem:[%s3399_s3 + $0x910] sm:$0xff] }
  0xdf   : > { %v1699_v52 = vpack.c.bf16 %v807_v48, %v799_v47  ;;  %v1777_v8 = vpack.c.bf16 %v746_v50, %v738_v49  ;;  %v1707_v48 = vpack.c.bf16 %v839_v37, %v831_v36  ;;  %v1803_v49 = vpack.c.bf16 %v841_v40, %v833_v39  ;;  %v847_v50 = vld [vmem:[%s3399_s3 + $0x880] sm:$0xff] }
  0xe0   : > { %v911_v36 = vld [vmem:[%s3399_s3 + $0xa80] sm:$0xff] }
  0xe1   : > { %1756 = vmatpush1.bf16.msra.mxu1 %v1755_v55  ;;  %1680 = vmatpush1.bf16.msra.mxu0 %v1679_v58  ;;  %v754_v55 = vld [vmem:[%s3399_s3 + $0x598] sm:$0xff]  ;;  %v919_v37 = vld [vmem:[%s3399_s3 + $0xac0] sm:$0xff] }
  0xe2   : > { %1758 = vmatprep.subr.bf16.mxu1 %v1757_v59  ;;  %1682 = vmatprep.subr.bf16.mxu0 %v1681_v61  ;;  %v1781_v58 = vpack.c.bf16 %v762_v56, %v754_v55  ;;  %v753_v59 = vld [vmem:[%s3399_s3 + $0x590] sm:$0xff]  ;;  %v770_v61 = vld [vmem:[%s3399_s3 + $0x618] sm:$0xff]  ;;  %v864_v56 = vld [vmem:[%s3399_s3 + $0x908] sm:$0xff] }
  0xe3   : > { %v1783_v63 = vpack.c.bf16 %v761_v60, %v753_v59  ;;  %v1785_v0 = vpack.c.bf16 %v778_v62, %v770_v61  ;;  %v857_v55 = vld [vmem:[%s3399_s3 + $0x8d0] sm:$0xff]  ;;  %v874_v59 = vld [vmem:[%s3399_s3 + $0x958] sm:$0xff]  ;;  %v863_v62 = vld [vmem:[%s3399_s3 + $0x900] sm:$0xff] }
  0xe4   : > { %v1807_v61 = vpack.c.bf16 %v857_v55, %v849_v54 }
  0xe5   : > { %1760 = vmatpush1.bf16.msra.mxu1 %v1759_v3  ;;  %1684 = vmatpush1.bf16.msra.mxu0 %v1683_v7  ;;  %v786_v3 = vld [vmem:[%s3399_s3 + $0x698] sm:$0xff] }
  0xe6   : > { %1762 = vmatprep.subr.bf16.mxu1 %v1761_v9  ;;  %1686 = vmatprep.subr.bf16.mxu0 %v1685_v11  ;;  %v1789_v7 = vpack.c.bf16 %v794_v4, %v786_v3  ;;  %v785_v9 = vld [vmem:[%s3399_s3 + $0x690] sm:$0xff]  ;;  %v802_v11 = vld [vmem:[%s3399_s3 + $0x718] sm:$0xff]  ;;  %v880_v4 = vld [vmem:[%s3399_s3 + $0x988] sm:$0xff] }
  0xe7   : > { %v1791_v13 = vpack.c.bf16 %v793_v10, %v785_v9  ;;  %v1793_v14 = vpack.c.bf16 %v810_v12, %v802_v11  ;;  %v873_v3 = vld [vmem:[%s3399_s3 + $0x950] sm:$0xff]  ;;  %v890_v9 = vld [vmem:[%s3399_s3 + $0x9d8] sm:$0xff]  ;;  %v879_v12 = vld [vmem:[%s3399_s3 + $0x980] sm:$0xff] }
  0xe8   : > { %v1811_v11 = vpack.c.bf16 %v873_v3, %v865_v2 }
  0xe9   : > { %1764 = vmatpush1.bf16.msra.mxu1 %v1763_v19  ;;  %1688 = vmatpush1.bf16.msra.mxu0 %v1687_v22  ;;  %v1795_v19 = vpack.c.bf16 %v809_v17, %v801_v15  ;;  %v818_v22 = vld [vmem:[%s3399_s3 + $0x798] sm:$0xff]  ;;  %v881_v17 = vld [vmem:[%s3399_s3 + $0x990] sm:$0xff] }
  0xea   : > { %1766 = vmatprep.subr.bf16.mxu1 %v1765_v16  ;;  %1690 = vmatprep.subr.bf16.mxu0 %v1689_v24  ;;  %v1701_v16 = vpack.c.bf16 %v824_v21, %v816_v20  ;;  %v815_v24 = vld [vmem:[%s3399_s3 + $0x780] sm:$0xff]  ;;  %v1797_v26 = vpack.c.bf16 %v826_v23, %v818_v22  ;;  %v896_v20 = vld [vmem:[%s3399_s3 + $0xa08] sm:$0xff]  ;;  %v898_v22 = vld [vmem:[%s3399_s3 + $0xa18] sm:$0xff] }
  0xeb   : > { %v1703_v18 = vpack.c.bf16 %v823_v25, %v815_v24  ;;  %v904_v21 = vld [vmem:[%s3399_s3 + $0xa48] sm:$0xff]  ;;  %v895_v25 = vld [vmem:[%s3399_s3 + $0xa00] sm:$0xff] }
  0xed   : > { %1768 = vmatpush1.bf16.msra.mxu1 %v1767_v29  ;;  %1692 = vmatpush1.bf16.msra.mxu0 %v1691_v32  ;;  %v1799_v29 = vpack.c.bf16 %v825_v28, %v817_v27  ;;  %v834_v32 = vld [vmem:[%s3399_s3 + $0x818] sm:$0xff]  ;;  %v897_v28 = vld [vmem:[%s3399_s3 + $0xa10] sm:$0xff] }
  0xee   : > { %1770 = vmatprep.subr.bf16.mxu1 %v1769_v33  ;;  %1694 = vmatprep.subr.bf16.mxu0 %v1693_v35  ;;  %v1705_v33 = vpack.c.bf16 %v840_v31, %v832_v30  ;;  %v1801_v35 = vpack.c.bf16 %v842_v34, %v834_v32  ;;  %v912_v30 = vld [vmem:[%s3399_s3 + $0xa88] sm:$0xff]  ;;  %v914_v32 = vld [vmem:[%s3399_s3 + $0xa98] sm:$0xff] }
  0xef   : > { %v920_v31 = vld [vmem:[%s3399_s3 + $0xac8] sm:$0xff] }
  0xf0   : > { %v1725_v39 = vpack.c.bf16 %v920_v31, %v912_v30 }
  0xf1   : > { %1772 = vmatpush1.bf16.msra.mxu1 %v1771_v41  ;;  %1696 = vmatpush1.bf16.msra.mxu0 %v1695_v44  ;;  %v848_v41 = vld [vmem:[%s3399_s3 + $0x888] sm:$0xff] }
  0xf2   : > { %1774 = vmatprep.subr.bf16.mxu1 %v1773_v45  ;;  %1698 = vmatprep.subr.bf16.mxu0 %v1697_v43  ;;  %v856_v44 = vld [vmem:[%s3399_s3 + $0x8c8] sm:$0xff]  ;;  %v850_v45 = vld [vmem:[%s3399_s3 + $0x898] sm:$0xff] }
  0xf3   : > { %v1805_v53 = vpack.c.bf16 %v858_v46, %v850_v45  ;;  %v936_v46 = vld [vmem:[%s3399_s3 + $0xb48] sm:$0xff] }
  0xf5   : > { %1776 = vmatpush1.bf16.msra.mxu1 %v1775_v51  ;;  %1700 = vmatpush1.bf16.msra.mxu0 %v1699_v52  ;;  %v855_v51 = vld [vmem:[%s3399_s3 + $0x8c0] sm:$0xff] }
  0xf6   : > { %1778 = vmatprep.subr.bf16.mxu1 %v1777_v8  ;;  %1702 = vmatprep.subr.bf16.mxu0 %v1701_v16  ;;  %v1709_v8 = vpack.c.bf16 %v856_v44, %v848_v41  ;;  %v1711_v60 = vpack.c.bf16 %v855_v51, %v847_v50  ;;  %v906_v16 = vld [vmem:[%s3399_s3 + $0xa58] sm:$0xff]  ;;  %v913_v41 = vld [vmem:[%s3399_s3 + $0xa90] sm:$0xff]  ;;  %v928_v44 = vld [vmem:[%s3399_s3 + $0xb08] sm:$0xff]  ;;  %v1727_v50 = vpack.c.bf16 %v919_v37, %v911_v36 }
  0xf7   : > { %v1817_v27 = vpack.c.bf16 %v906_v16, %v898_v22  ;;  %v1729_v54 = vpack.c.bf16 %v936_v46, %v928_v44  ;;  %v596_v22 = vld [vmem:[%s3399_s3 + $0xa8] sm:$0xff] }
  0xf8   : > { %v604_v16 = vld [vmem:[%s3399_s3 + $0xe8] sm:$0xff] }
  0xf9   : > { %1780 = vmatpush1.bf16.msra.mxu1 %v1779_v57  ;;  %1704 = vmatpush1.bf16.msra.mxu0 %v1703_v18  ;;  %v872_v57 = vld [vmem:[%s3399_s3 + $0x948] sm:$0xff]  ;;  %v1721_v18 = vpack.c.bf16 %v904_v21, %v896_v20  ;;  %v581_v20 = vld [vmem:[%s3399_s3 + $0x30] sm:$0xff]  ;;  %v1837_v30 = vpack.c.bf16 %v604_v16, %v596_v22  ;;  %v678_v16 = vld [vmem:[%s3399_s3 + $0x338] sm:$0xff] }
  0xfa   : > { %1782 = vmatprep.subr.bf16.mxu1 %v1781_v58  ;;  %1706 = vmatprep.subr.bf16.mxu0 %v1705_v33  ;;  %v866_v58 = vld [vmem:[%s3399_s3 + $0x918] sm:$0xff]  ;;  %v589_v21 = vld [vmem:[%s3399_s3 + $0x70] sm:$0xff]  ;;  %v636_v46 = vld [vmem:[%s3399_s3 + $0x1e8] sm:$0xff] }
  0xfb   : > { %v1809_v1 = vpack.c.bf16 %v874_v59, %v866_v58  ;;  %v922_v33 = vld [vmem:[%s3399_s3 + $0xad8] sm:$0xff]  ;;  %v944_v58 = vld [vmem:[%s3399_s3 + $0xb88] sm:$0xff] }
  0xfc   : > { %v1821_v40 = vpack.c.bf16 %v922_v33, %v914_v32  ;;  %v952_v59 = vld [vmem:[%s3399_s3 + $0xbc8] sm:$0xff] }
  0xfd   : > { %1784 = vmatpush1.bf16.msra.mxu1 %v1783_v63  ;;  %v871_v63 = vld [vmem:[%s3399_s3 + $0x940] sm:$0xff]  ;;  %v1733_v2 = vpack.c.bf16 %v952_v59, %v944_v58  ;;  %v612_v32 = vld [vmem:[%s3399_s3 + $0x128] sm:$0xff]  ;;  %v646_v59 = vld [vmem:[%s3399_s3 + $0x238] sm:$0xff] }
  0xfe   : > { %1786 = vmatprep.subr.bf16.mxu1 %v1785_v0  ;;  %v1713_v0 = vpack.c.bf16 %v872_v57, %v864_v56  ;;  %v1715_v10 = vpack.c.bf16 %v871_v63, %v863_v62  ;;  %v929_v56 = vld [vmem:[%s3399_s3 + $0xb10] sm:$0xff]  ;;  %v620_v33 = vld [vmem:[%s3399_s3 + $0x168] sm:$0xff] }
  0xff   : > { %v937_v57 = vld [vmem:[%s3399_s3 + $0xb50] sm:$0xff]  ;;  %v652_v58 = vld [vmem:[%s3399_s3 + $0x268] sm:$0xff] }
 0x100   : > { %v1827_v63 = vpack.c.bf16 %v937_v57, %v929_v56  ;;  %v637_v56 = vld [vmem:[%s3399_s3 + $0x1f0] sm:$0xff]  ;;  %v644_v57 = vld [vmem:[%s3399_s3 + $0x228] sm:$0xff] }
 0x101   : > { %1788 = vmatpush1.bf16.msra.mxu1 %v1787_v5  ;;  %v888_v5 = vld [vmem:[%s3399_s3 + $0x9c8] sm:$0xff] }
 0x102   : > { %1790 = vmatprep.subr.bf16.mxu1 %v1789_v7  ;;  %v882_v7 = vld [vmem:[%s3399_s3 + $0x998] sm:$0xff]  ;;  %v684_v22 = vld [vmem:[%s3399_s3 + $0x368] sm:$0xff] }
 0x103   : > { %v1813_v15 = vpack.c.bf16 %v890_v9, %v882_v7  ;;  %v580_v7 = vld [vmem:[%s3399_s3 + $0x28] sm:$0xff] }
 0x104   : > { %v588_v9 = vld [vmem:[%s3399_s3 + $0x68] sm:$0xff] }
 0x105   : > { %1792 = vmatpush1.bf16.msra.mxu1 %v1791_v13  ;;  %v887_v13 = vld [vmem:[%s3399_s3 + $0x9c0] sm:$0xff] }
 0x106   : > { %1794 = vmatprep.subr.bf16.mxu1 %v1793_v14  ;;  %v1717_v14 = vpack.c.bf16 %v888_v5, %v880_v4  ;;  %v1719_v23 = vpack.c.bf16 %v887_v13, %v879_v12  ;;  %v945_v4 = vld [vmem:[%s3399_s3 + $0xb90] sm:$0xff] }
 0x107   : > { %v953_v5 = vld [vmem:[%s3399_s3 + $0xbd0] sm:$0xff] }
 0x108   : > { %v1831_v13 = vpack.c.bf16 %v953_v5, %v945_v4  ;;  %v653_v4 = vld [vmem:[%s3399_s3 + $0x270] sm:$0xff]  ;;  %v660_v5 = vld [vmem:[%s3399_s3 + $0x2a8] sm:$0xff] }
 0x109   : > { %1796 = vmatpush1.bf16.msra.mxu1 %v1795_v19  ;;  %v889_v19 = vld [vmem:[%s3399_s3 + $0x9d0] sm:$0xff] }
 0x10a   : > { %1798 = vmatprep.subr.bf16.mxu1 %v1797_v26  ;;  %v1815_v24 = vpack.c.bf16 %v889_v19, %v881_v17  ;;  %v903_v26 = vld [vmem:[%s3399_s3 + $0xa40] sm:$0xff] }
 0x10b   : > { %v1723_v34 = vpack.c.bf16 %v903_v26, %v895_v25  ;;  %v579_v17 = vld [vmem:[%s3399_s3 + $0x20] sm:$0xff] }
 0x10c   : > { %v587_v19 = vld [vmem:[%s3399_s3 + $0x60] sm:$0xff] }
 0x10d   : > { %1800 = vmatpush1.bf16.msra.mxu1 %v1799_v29  ;;  %v905_v29 = vld [vmem:[%s3399_s3 + $0xa50] sm:$0xff]  ;;  %v1835_v25 = vpack.c.bf16 %v587_v19, %v579_v17 }
 0x10e   : > { %1802 = vmatprep.subr.bf16.mxu1 %v1801_v35  ;;  %v1819_v35 = vpack.c.bf16 %v905_v29, %v897_v28  ;;  %v603_v28 = vld [vmem:[%s3399_s3 + $0xe0] sm:$0xff]  ;;  %v597_v29 = vld [vmem:[%s3399_s3 + $0xb0] sm:$0xff] }
 0x10f   : > { %v661_v17 = vld [vmem:[%s3399_s3 + $0x2b0] sm:$0xff] }
 0x18f   : > { %v500_v42 = vpop.f32.mrb[0].mxu0 }
 0x190   : > { %v502_v43 = vpop.f32.mrb[1].mxu0  ;;  %v2642_v52 = vadd.f32 %v500_v42, %v2612_v38  ;;  %v921_v42 = vld [vmem:[%s3399_s3 + $0xad0] sm:$0xff] }
 0x191   : > { %v2633_v47 = vadd.f32 %v502_v43, %v2612_v38  ;;  %v930_v43 = vld [vmem:[%s3399_s3 + $0xb18] sm:$0xff]  ;;  %v1823_v51 = vpack.c.bf16 %v921_v42, %v913_v41  ;;  %v619_v41 = vld [vmem:[%s3399_s3 + $0x160] sm:$0xff]  ;;  %v613_v42 = vld [vmem:[%s3399_s3 + $0x130] sm:$0xff] }
 0x193   : > { %1023 = vmatprep.mubr.f32.mxu0 %v2633_v47  ;;  %1165 = vmatprep.mubr.f32.mxu1 %v2633_v47 }
 0x194   : > { %1024 = vmatmul.mubr.f32.vlgmr.msra.gmra.mrb[2].mxu0 %v2642_v52  ;;  %1166 = vmatmul.mubr.f32.vlgmr.msra.gmra.mrb[2].mxu1 %v2642_v52 }
 0x195   : > { %1708 = vmatpush1.bf16.msra.mxu0 %v1707_v48  ;;  %1804 = vmatpush1.bf16.msra.mxu1 %v1803_v49  ;;  %v938_v48 = vld [vmem:[%s3399_s3 + $0xb58] sm:$0xff] }
 0x196   : > { %1710 = vmatprep.subr.bf16.mxu0 %v1709_v8  ;;  %1806 = vmatprep.subr.bf16.mxu1 %v1805_v53  ;;  %v927_v8 = vld [vmem:[%s3399_s3 + $0xb00] sm:$0xff]  ;;  %v1825_v55 = vpack.c.bf16 %v938_v48, %v930_v43  ;;  %v630_v43 = vld [vmem:[%s3399_s3 + $0x1b8] sm:$0xff] }
 0x197   : > { %1094 = vmatprep.mubr.f32.mxu0 %v2074_v6  ;;  %1236 = vmatprep.mubr.f32.mxu1 %v2074_v6  ;;  %v935_v53 = vld [vmem:[%s3399_s3 + $0xb40] sm:$0xff]  ;;  %v638_v48 = vld [vmem:[%s3399_s3 + $0x1f8] sm:$0xff] }
 0x198   : > { %v1731_v62 = vpack.c.bf16 %v935_v53, %v927_v8  ;;  %v627_v8 = vld [vmem:[%s3399_s3 + $0x1a0] sm:$0xff] }
 0x199   : > { %1712 = vmatpush1.bf16.msra.mxu0 %v1711_v60  ;;  %1808 = vmatpush1.bf16.msra.mxu1 %v1807_v61  ;;  %v946_v60 = vld [vmem:[%s3399_s3 + $0xb98] sm:$0xff]  ;;  %v635_v53 = vld [vmem:[%s3399_s3 + $0x1e0] sm:$0xff] }
 0x19a   : > { %1714 = vmatprep.subr.bf16.mxu0 %v1713_v0  ;;  %1810 = vmatprep.subr.bf16.mxu1 %v1809_v1  ;;  %v954_v61 = vld [vmem:[%s3399_s3 + $0xbd8] sm:$0xff]  ;;  %v943_v0 = vld [vmem:[%s3399_s3 + $0xb80] sm:$0xff] }
 0x19b   : > { %v951_v1 = vld [vmem:[%s3399_s3 + $0xbc0] sm:$0xff]  ;;  %v1829_v3 = vpack.c.bf16 %v954_v61, %v946_v60  ;;  %v654_v60 = vld [vmem:[%s3399_s3 + $0x278] sm:$0xff]  ;;  %v1847_v61 = vpack.c.bf16 %v635_v53, %v627_v8  ;;  %v709_v53 = vld [vmem:[%s3399_s3 + $0x430] sm:$0xff] }
 0x19c   : > { %v1735_v12 = vpack.c.bf16 %v951_v1, %v943_v0  ;;  %v643_v0 = vld [vmem:[%s3399_s3 + $0x220] sm:$0xff] }
 0x19d   : > { %1716 = vmatpush1.bf16.msra.mxu0 %v1715_v10  ;;  %1812 = vmatpush1.bf16.msra.mxu1 %v1811_v11  ;;  %v582_v10 = vld [vmem:[%s3399_s3 + $0x38] sm:$0xff]  ;;  %v651_v1 = vld [vmem:[%s3399_s3 + $0x260] sm:$0xff] }
 0x19e   : > { %1718 = vmatprep.subr.bf16.mxu0 %v1717_v14  ;;  %1814 = vmatprep.subr.bf16.mxu1 %v1813_v15  ;;  %v590_v11 = vld [vmem:[%s3399_s3 + $0x78] sm:$0xff]  ;;  %v1833_v14 = vpack.c.bf16 %v588_v9, %v580_v7  ;;  %v668_v7 = vld [vmem:[%s3399_s3 + $0x2e8] sm:$0xff]  ;;  %v715_v8 = vld [vmem:[%s3399_s3 + $0x460] sm:$0xff] }
 0x19f   : > { %v1929_v15 = vpack.c.bf16 %v590_v11, %v582_v10  ;;  %v662_v9 = vld [vmem:[%s3399_s3 + $0x2b8] sm:$0xff]  ;;  %v1851_v11 = vpack.c.bf16 %v651_v1, %v643_v0  ;;  %v731_v0 = vld [vmem:[%s3399_s3 + $0x4e0] sm:$0xff]  ;;  %v725_v1 = vld [vmem:[%s3399_s3 + $0x4b0] sm:$0xff] }
 0x1a0   : > { %v670_v10 = vld [vmem:[%s3399_s3 + $0x2f8] sm:$0xff] }
 0x1a1   : > { %1720 = vmatpush1.bf16.msra.mxu0 %v1719_v23  ;;  %1816 = vmatpush1.bf16.msra.mxu1 %v1815_v24  ;;  %v598_v23 = vld [vmem:[%s3399_s3 + $0xb8] sm:$0xff]  ;;  %v1949_v19 = vpack.c.bf16 %v670_v10, %v662_v9 }
 0x1a2   : > { %1722 = vmatprep.subr.bf16.mxu0 %v1721_v18  ;;  %1818 = vmatprep.subr.bf16.mxu1 %v1817_v27  ;;  %v606_v24 = vld [vmem:[%s3399_s3 + $0xf8] sm:$0xff]  ;;  %v1931_v18 = vpack.c.bf16 %v589_v21, %v581_v20  ;;  %v595_v27 = vld [vmem:[%s3399_s3 + $0xa0] sm:$0xff]  ;;  %v669_v20 = vld [vmem:[%s3399_s3 + $0x2f0] sm:$0xff] }
 0x1a3   : > { %v571_v45 = vpop.f32.mrb[0].mxu1  ;;  %v1933_v31 = vpack.c.bf16 %v606_v24, %v598_v23  ;;  %v1839_v36 = vpack.c.bf16 %v603_v28, %v595_v27  ;;  %v676_v21 = vld [vmem:[%s3399_s3 + $0x328] sm:$0xff]  ;;  %v686_v23 = vld [vmem:[%s3399_s3 + $0x378] sm:$0xff]  ;;  %v675_v27 = vld [vmem:[%s3399_s3 + $0x320] sm:$0xff] }
 0x1a4   : > { %v1626_v49 = vpop.f32.mrb[1].mxu1  ;;  %v2837_v26 = vadd.f32 %v571_v45, %v2612_v38  ;;  %v605_v38 = vld [vmem:[%s3399_s3 + $0xf0] sm:$0xff]  ;;  %v628_v45 = vld [vmem:[%s3399_s3 + $0x1a8] sm:$0xff]  ;;  %v683_v28 = vld [vmem:[%s3399_s3 + $0x360] sm:$0xff] }
 0x1a5   : > { %1724 = vmatpush1.bf16.msra.mxu0 %v1723_v34  ;;  %1820 = vmatpush1.bf16.msra.mxu1 %v1819_v35  ;;  %v614_v34 = vld [vmem:[%s3399_s3 + $0x138] sm:$0xff]  ;;  %v1935_v37 = vpack.c.bf16 %v605_v38, %v597_v29  ;;  %v677_v29 = vld [vmem:[%s3399_s3 + $0x330] sm:$0xff]  ;;  %v692_v38 = vld [vmem:[%s3399_s3 + $0x3a8] sm:$0xff] }
 0x1a6   : > { %1726 = vmatprep.subr.bf16.mxu0 %v1725_v39  ;;  %1822 = vmatprep.subr.bf16.mxu1 %v1821_v40  ;;  %v622_v35 = vld [vmem:[%s3399_s3 + $0x178] sm:$0xff]  ;;  %v1841_v39 = vpack.c.bf16 %v620_v33, %v612_v32  ;;  %v611_v40 = vld [vmem:[%s3399_s3 + $0x120] sm:$0xff]  ;;  %v700_v32 = vld [vmem:[%s3399_s3 + $0x3e8] sm:$0xff] }
 0x1a7   : > { %v1937_v44 = vpack.c.bf16 %v622_v35, %v614_v34  ;;  %v1843_v49 = vpack.c.bf16 %v619_v41, %v611_v40  ;;  %v694_v33 = vld [vmem:[%s3399_s3 + $0x3b8] sm:$0xff]  ;;  %v1859_v35 = vpack.c.bf16 %v683_v28, %v675_v27  ;;  %v699_v40 = vld [vmem:[%s3399_s3 + $0x3e0] sm:$0xff]  ;;  %v693_v41 = vld [vmem:[%s3399_s3 + $0x3b0] sm:$0xff] }
 0x1a8   : > { %v702_v34 = vld [vmem:[%s3399_s3 + $0x3f8] sm:$0xff]  ;;  %v763_v27 = vld [vmem:[%s3399_s3 + $0x5e0] sm:$0xff]  ;;  %v757_v28 = vld [vmem:[%s3399_s3 + $0x5b0] sm:$0xff] }
 0x1a9   : > { %1728 = vmatpush1.bf16.msra.mxu0 %v1727_v50  ;;  %1824 = vmatpush1.bf16.msra.mxu1 %v1823_v51  ;;  %v1845_v51 = vpack.c.bf16 %v636_v46, %v628_v45  ;;  %v716_v45 = vld [vmem:[%s3399_s3 + $0x468] sm:$0xff]  ;;  %v710_v46 = vld [vmem:[%s3399_s3 + $0x438] sm:$0xff] }
 0x1aa   : > { %1730 = vmatprep.subr.bf16.mxu0 %v1729_v54  ;;  %1826 = vmatprep.subr.bf16.mxu1 %v1825_v55  ;;  %v629_v54 = vld [vmem:[%s3399_s3 + $0x1b0] sm:$0xff]  ;;  %v1941_v55 = vpack.c.bf16 %v638_v48, %v630_v43  ;;  %v718_v43 = vld [vmem:[%s3399_s3 + $0x478] sm:$0xff] }
 0x1ab   : > { %v750_v9 = vld [vmem:[%s3399_s3 + $0x578] sm:$0xff] }
 0x1ad   : > { %1732 = vmatpush1.bf16.msra.mxu0 %v1731_v62  ;;  %1828 = vmatpush1.bf16.msra.mxu1 %v1827_v63  ;;  %v1943_v62 = vpack.c.bf16 %v637_v56, %v629_v54  ;;  %v1849_v63 = vpack.c.bf16 %v652_v58, %v644_v57  ;;  %v1961_v54 = vpack.c.bf16 %v718_v43, %v710_v46  ;;  %v724_v56 = vld [vmem:[%s3399_s3 + $0x4a8] sm:$0xff]  ;;  %v726_v58 = vld [vmem:[%s3399_s3 + $0x4b8] sm:$0xff] }
 0x1ae   : > { %1734 = vmatprep.subr.bf16.mxu0 %v1733_v2  ;;  %1830 = vmatprep.subr.bf16.mxu1 %v1829_v3  ;;  %v645_v2 = vld [vmem:[%s3399_s3 + $0x230] sm:$0xff]  ;;  %v1945_v3 = vpack.c.bf16 %v654_v60, %v646_v59  ;;  %v732_v57 = vld [vmem:[%s3399_s3 + $0x4e8] sm:$0xff]  ;;  %v734_v59 = vld [vmem:[%s3399_s3 + $0x4f8] sm:$0xff] }
 0x1af   : > { %v798_v46 = vld [vmem:[%s3399_s3 + $0x6f8] sm:$0xff] }
 0x1b1   : > { %1736 = vmatpush1.bf16.msra.mxu0 %v1735_v12  ;;  %1832 = vmatpush1.bf16.msra.mxu1 %v1831_v13  ;;  %v1947_v12 = vpack.c.bf16 %v653_v4, %v645_v2  ;;  %v1853_v13 = vpack.c.bf16 %v668_v7, %v660_v5  ;;  %v1965_v2 = vpack.c.bf16 %v734_v59, %v726_v58  ;;  %v740_v4 = vld [vmem:[%s3399_s3 + $0x528] sm:$0xff]  ;;  %v742_v7 = vld [vmem:[%s3399_s3 + $0x538] sm:$0xff] }
 0x1b2   : > { %1834 = vmatprep.subr.bf16.mxu0 %v1833_v14  ;;  %1930 = vmatprep.subr.bf16.mxu1 %v1929_v15  ;;  %v659_v14 = vld [vmem:[%s3399_s3 + $0x2a0] sm:$0xff]  ;;  %v748_v5 = vld [vmem:[%s3399_s3 + $0x568] sm:$0xff]  ;;  %v814_v58 = vld [vmem:[%s3399_s3 + $0x778] sm:$0xff] }
 0x1b3   : > { %v667_v15 = vld [vmem:[%s3399_s3 + $0x2e0] sm:$0xff] }
 0x1b4   : > { %1095 = vmatmul.mubr.f32.vlgmr.msra.gmra.mrb[2].mxu0 %v2837_v26  ;;  %1237 = vmatmul.mubr.f32.vlgmr.msra.gmra.mrb[2].mxu1 %v2837_v26  ;;  %v1855_v24 = vpack.c.bf16 %v667_v15, %v659_v14  ;;  %v747_v14 = vld [vmem:[%s3399_s3 + $0x560] sm:$0xff]  ;;  %v741_v15 = vld [vmem:[%s3399_s3 + $0x530] sm:$0xff] }
 0x1b5   : > { %1836 = vmatpush1.bf16.msra.mxu0 %v1835_v25  ;;  %1307 = vmatprep.mubr.f32.mxu0 %v2633_v47  ;;  %v1951_v25 = vpack.c.bf16 %v669_v20, %v661_v17  ;;  %v1969_v17 = vpack.c.bf16 %v750_v9, %v742_v7  ;;  %v756_v20 = vld [vmem:[%s3399_s3 + $0x5a8] sm:$0xff]  ;;  %v830_v7 = vld [vmem:[%s3399_s3 + $0x7f8] sm:$0xff] }
 0x1b6   : > { %1932 = vmatpush1.bf16.msra.mxu1 %v1931_v18  ;;  %1449 = vmatprep.mubr.f32.mxu1 %v2633_v47  ;;  %v621_v47 = vld [vmem:[%s3399_s3 + $0x170] sm:$0xff]  ;;  %v1857_v18 = vpack.c.bf16 %v684_v22, %v676_v21  ;;  %v764_v21 = vld [vmem:[%s3399_s3 + $0x5e8] sm:$0xff]  ;;  %v758_v22 = vld [vmem:[%s3399_s3 + $0x5b8] sm:$0xff] }
 0x1b7   : > { %1838 = vmatprep.subr.bf16.mxu0 %v1837_v30  ;;  %1934 = vmatprep.subr.bf16.mxu1 %v1933_v31  ;;  %v1939_v50 = vpack.c.bf16 %v621_v47, %v613_v42  ;;  %v1953_v30 = vpack.c.bf16 %v686_v23, %v678_v16  ;;  %v685_v31 = vld [vmem:[%s3399_s3 + $0x370] sm:$0xff]  ;;  %v1957_v42 = vpack.c.bf16 %v702_v34, %v694_v33  ;;  %v708_v47 = vld [vmem:[%s3399_s3 + $0x428] sm:$0xff]  ;;  %v766_v16 = vld [vmem:[%s3399_s3 + $0x5f8] sm:$0xff] }
 0x1b8   : > { %v782_v33 = vld [vmem:[%s3399_s3 + $0x678] sm:$0xff] }
 0x1b9   : > { %1840 = vmatpush1.bf16.msra.mxu0 %v1839_v36  ;;  %v1955_v36 = vpack.c.bf16 %v685_v31, %v677_v29  ;;  %v1973_v29 = vpack.c.bf16 %v766_v16, %v758_v22  ;;  %v772_v31 = vld [vmem:[%s3399_s3 + $0x628] sm:$0xff]  ;;  %v846_v22 = vld [vmem:[%s3399_s3 + $0x878] sm:$0xff] }
 0x1ba   : > { %1936 = vmatpush1.bf16.msra.mxu1 %v1935_v37  ;;  %1842 = vmatprep.subr.bf16.mxu0 %v1841_v39  ;;  %v1861_v37 = vpack.c.bf16 %v700_v32, %v692_v38  ;;  %v691_v39 = vld [vmem:[%s3399_s3 + $0x3a0] sm:$0xff]  ;;  %v780_v38 = vld [vmem:[%s3399_s3 + $0x668] sm:$0xff]  ;;  %v774_v32 = vld [vmem:[%s3399_s3 + $0x638] sm:$0xff] }
 0x1bb   : > { %1938 = vmatprep.subr.bf16.mxu1 %v1937_v44  ;;  %v701_v44 = vld [vmem:[%s3399_s3 + $0x3f0] sm:$0xff]  ;;  %v1863_v48 = vpack.c.bf16 %v699_v40, %v691_v39  ;;  %v779_v39 = vld [vmem:[%s3399_s3 + $0x660] sm:$0xff] }
 0x1bc   : > { %v773_v40 = vld [vmem:[%s3399_s3 + $0x630] sm:$0xff] }
 0x1bd   : > { %1844 = vmatpush1.bf16.msra.mxu0 %v1843_v49  ;;  %v1959_v49 = vpack.c.bf16 %v701_v44, %v693_v41  ;;  %v1977_v41 = vpack.c.bf16 %v782_v33, %v774_v32  ;;  %v788_v44 = vld [vmem:[%s3399_s3 + $0x6a8] sm:$0xff]  ;;  %v862_v32 = vld [vmem:[%s3399_s3 + $0x8f8] sm:$0xff] }
 0x1be   : > { %1940 = vmatpush1.bf16.msra.mxu1 %v1939_v50  ;;  %1846 = vmatprep.subr.bf16.mxu0 %v1845_v51  ;;  %v1865_v50 = vpack.c.bf16 %v716_v45, %v708_v47  ;;  %v707_v51 = vld [vmem:[%s3399_s3 + $0x420] sm:$0xff]  ;;  %v796_v47 = vld [vmem:[%s3399_s3 + $0x6e8] sm:$0xff]  ;;  %v790_v45 = vld [vmem:[%s3399_s3 + $0x6b8] sm:$0xff] }
 0x1bf   : > { %1942 = vmatprep.subr.bf16.mxu1 %v1941_v55  ;;  %v717_v55 = vld [vmem:[%s3399_s3 + $0x470] sm:$0xff]  ;;  %v1867_v60 = vpack.c.bf16 %v715_v8, %v707_v51  ;;  %v795_v51 = vld [vmem:[%s3399_s3 + $0x6e0] sm:$0xff] }
 0x1c0   : > { %v789_v8 = vld [vmem:[%s3399_s3 + $0x6b0] sm:$0xff] }
 0x1c1   : > { %1848 = vmatpush1.bf16.msra.mxu0 %v1847_v61  ;;  %v1963_v61 = vpack.c.bf16 %v717_v55, %v709_v53  ;;  %v1981_v53 = vpack.c.bf16 %v798_v46, %v790_v45  ;;  %v804_v55 = vld [vmem:[%s3399_s3 + $0x728] sm:$0xff]  ;;  %v878_v45 = vld [vmem:[%s3399_s3 + $0x978] sm:$0xff] }
 0x1c2   : > { %1944 = vmatpush1.bf16.msra.mxu1 %v1943_v62  ;;  %1850 = vmatprep.subr.bf16.mxu0 %v1849_v63  ;;  %v1869_v62 = vpack.c.bf16 %v732_v57, %v724_v56  ;;  %v723_v63 = vld [vmem:[%s3399_s3 + $0x4a0] sm:$0xff]  ;;  %v812_v56 = vld [vmem:[%s3399_s3 + $0x768] sm:$0xff]  ;;  %v806_v57 = vld [vmem:[%s3399_s3 + $0x738] sm:$0xff] }
 0x1c3   : > { %1946 = vmatprep.subr.bf16.mxu1 %v1945_v3  ;;  %v733_v3 = vld [vmem:[%s3399_s3 + $0x4f0] sm:$0xff]  ;;  %v1871_v10 = vpack.c.bf16 %v731_v0, %v723_v63  ;;  %v811_v63 = vld [vmem:[%s3399_s3 + $0x760] sm:$0xff] }
 0x1c4   : > { %v805_v0 = vld [vmem:[%s3399_s3 + $0x730] sm:$0xff] }
 0x1c5   : > { %1852 = vmatpush1.bf16.msra.mxu0 %v1851_v11  ;;  %v1967_v11 = vpack.c.bf16 %v733_v3, %v725_v1  ;;  %v1985_v1 = vpack.c.bf16 %v814_v58, %v806_v57  ;;  %v820_v3 = vld [vmem:[%s3399_s3 + $0x7a8] sm:$0xff] }
 0x1c6   : > { %1948 = vmatpush1.bf16.msra.mxu1 %v1947_v12  ;;  %1854 = vmatprep.subr.bf16.mxu0 %v1853_v13  ;;  %v1873_v12 = vpack.c.bf16 %v748_v5, %v740_v4  ;;  %v739_v13 = vld [vmem:[%s3399_s3 + $0x520] sm:$0xff]  ;;  %v828_v4 = vld [vmem:[%s3399_s3 + $0x7e8] sm:$0xff]  ;;  %v822_v5 = vld [vmem:[%s3399_s3 + $0x7b8] sm:$0xff] }
 0x1c7   : > { %1950 = vmatprep.subr.bf16.mxu1 %v1949_v19  ;;  %v749_v19 = vld [vmem:[%s3399_s3 + $0x570] sm:$0xff]  ;;  %v1875_v23 = vpack.c.bf16 %v747_v14, %v739_v13  ;;  %v827_v13 = vld [vmem:[%s3399_s3 + $0x7e0] sm:$0xff] }
 0x1c8   : > { %v821_v14 = vld [vmem:[%s3399_s3 + $0x7b0] sm:$0xff] }
 0x1c9   : > { %1856 = vmatpush1.bf16.msra.mxu0 %v1855_v24  ;;  %v1971_v24 = vpack.c.bf16 %v749_v19, %v741_v15  ;;  %v1989_v15 = vpack.c.bf16 %v830_v7, %v822_v5  ;;  %v836_v19 = vld [vmem:[%s3399_s3 + $0x828] sm:$0xff] }
 0x1ca   : > { %1952 = vmatpush1.bf16.msra.mxu1 %v1951_v25  ;;  %1858 = vmatprep.subr.bf16.mxu0 %v1857_v18  ;;  %v1877_v25 = vpack.c.bf16 %v764_v21, %v756_v20  ;;  %v755_v18 = vld [vmem:[%s3399_s3 + $0x5a0] sm:$0xff]  ;;  %v844_v20 = vld [vmem:[%s3399_s3 + $0x868] sm:$0xff]  ;;  %v838_v21 = vld [vmem:[%s3399_s3 + $0x838] sm:$0xff] }
 0x1cb   : > { %1954 = vmatprep.subr.bf16.mxu1 %v1953_v30  ;;  %v765_v30 = vld [vmem:[%s3399_s3 + $0x5f0] sm:$0xff]  ;;  %v1879_v34 = vpack.c.bf16 %v763_v27, %v755_v18  ;;  %v843_v18 = vld [vmem:[%s3399_s3 + $0x860] sm:$0xff] }
 0x1cc   : > { %v837_v27 = vld [vmem:[%s3399_s3 + $0x830] sm:$0xff] }
 0x1cd   : > { %1860 = vmatpush1.bf16.msra.mxu0 %v1859_v35  ;;  %v1975_v35 = vpack.c.bf16 %v765_v30, %v757_v28  ;;  %v1993_v28 = vpack.c.bf16 %v846_v22, %v838_v21  ;;  %v852_v30 = vld [vmem:[%s3399_s3 + $0x8a8] sm:$0xff] }
 0x1ce   : > { %1956 = vmatpush1.bf16.msra.mxu1 %v1955_v36  ;;  %1862 = vmatprep.subr.bf16.mxu0 %v1861_v37  ;;  %v1881_v36 = vpack.c.bf16 %v780_v38, %v772_v31  ;;  %v771_v37 = vld [vmem:[%s3399_s3 + $0x620] sm:$0xff]  ;;  %v860_v31 = vld [vmem:[%s3399_s3 + $0x8e8] sm:$0xff]  ;;  %v854_v38 = vld [vmem:[%s3399_s3 + $0x8b8] sm:$0xff] }
 0x1cf   : > { %1958 = vmatprep.subr.bf16.mxu1 %v1957_v42  ;;  %v781_v42 = vld [vmem:[%s3399_s3 + $0x670] sm:$0xff]  ;;  %v1883_v43 = vpack.c.bf16 %v779_v39, %v771_v37  ;;  %v859_v37 = vld [vmem:[%s3399_s3 + $0x8e0] sm:$0xff] }
 0x1d0   : > { %v853_v39 = vld [vmem:[%s3399_s3 + $0x8b0] sm:$0xff] }
 0x1d1   : > { %1864 = vmatpush1.bf16.msra.mxu0 %v1863_v48  ;;  %v1979_v48 = vpack.c.bf16 %v781_v42, %v773_v40  ;;  %v1997_v40 = vpack.c.bf16 %v862_v32, %v854_v38  ;;  %v868_v42 = vld [vmem:[%s3399_s3 + $0x928] sm:$0xff] }
 0x1d2   : > { %1960 = vmatpush1.bf16.msra.mxu1 %v1959_v49  ;;  %1866 = vmatprep.subr.bf16.mxu0 %v1865_v50  ;;  %v1885_v49 = vpack.c.bf16 %v796_v47, %v788_v44  ;;  %v787_v50 = vld [vmem:[%s3399_s3 + $0x6a0] sm:$0xff]  ;;  %v876_v44 = vld [vmem:[%s3399_s3 + $0x968] sm:$0xff]  ;;  %v870_v47 = vld [vmem:[%s3399_s3 + $0x938] sm:$0xff] }
 0x1d3   : > { %1962 = vmatprep.subr.bf16.mxu1 %v1961_v54  ;;  %v797_v54 = vld [vmem:[%s3399_s3 + $0x6f0] sm:$0xff]  ;;  %v1887_v59 = vpack.c.bf16 %v795_v51, %v787_v50  ;;  %v875_v50 = vld [vmem:[%s3399_s3 + $0x960] sm:$0xff] }
 0x1d4   : > { %v869_v51 = vld [vmem:[%s3399_s3 + $0x930] sm:$0xff] }
 0x1d5   : > { %1868 = vmatpush1.bf16.msra.mxu0 %v1867_v60  ;;  %v1983_v60 = vpack.c.bf16 %v797_v54, %v789_v8  ;;  %v877_v8 = vld [vmem:[%s3399_s3 + $0x970] sm:$0xff]  ;;  %v892_v54 = vld [vmem:[%s3399_s3 + $0x9e8] sm:$0xff] }
 0x1d6   : > { %1964 = vmatpush1.bf16.msra.mxu1 %v1963_v61  ;;  %1870 = vmatprep.subr.bf16.mxu0 %v1869_v62  ;;  %v1889_v61 = vpack.c.bf16 %v812_v56, %v804_v55  ;;  %v803_v62 = vld [vmem:[%s3399_s3 + $0x720] sm:$0xff]  ;;  %v886_v55 = vld [vmem:[%s3399_s3 + $0x9b8] sm:$0xff]  ;;  %v2003_v58 = vpack.c.bf16 %v877_v8, %v869_v51 }
 0x1d7   : > { %1966 = vmatprep.subr.bf16.mxu1 %v1965_v2  ;;  %v813_v2 = vld [vmem:[%s3399_s3 + $0x770] sm:$0xff]  ;;  %v1891_v9 = vpack.c.bf16 %v811_v63, %v803_v62  ;;  %v894_v56 = vld [vmem:[%s3399_s3 + $0x9f8] sm:$0xff] }
 0x1d8   : > { %v885_v62 = vld [vmem:[%s3399_s3 + $0x9b0] sm:$0xff] }
 0x1d9   : > { %1872 = vmatpush1.bf16.msra.mxu0 %v1871_v10  ;;  %v1987_v10 = vpack.c.bf16 %v813_v2, %v805_v0  ;;  %v893_v63 = vld [vmem:[%s3399_s3 + $0x9f0] sm:$0xff]  ;;  %v900_v0 = vld [vmem:[%s3399_s3 + $0xa28] sm:$0xff]  ;;  %v902_v2 = vld [vmem:[%s3399_s3 + $0xa38] sm:$0xff] }
 0x1da   : > { %1968 = vmatpush1.bf16.msra.mxu1 %v1967_v11  ;;  %1874 = vmatprep.subr.bf16.mxu0 %v1873_v12  ;;  %v1893_v11 = vpack.c.bf16 %v828_v4, %v820_v3  ;;  %v819_v12 = vld [vmem:[%s3399_s3 + $0x7a0] sm:$0xff]  ;;  %v910_v3 = vld [vmem:[%s3399_s3 + $0xa78] sm:$0xff]  ;;  %v2007_v5 = vpack.c.bf16 %v893_v63, %v885_v62 }
 0x1db   : > { %1970 = vmatprep.subr.bf16.mxu1 %v1969_v17  ;;  %v829_v17 = vld [vmem:[%s3399_s3 + $0x7f0] sm:$0xff]  ;;  %v1895_v16 = vpack.c.bf16 %v827_v13, %v819_v12  ;;  %v2009_v12 = vpack.c.bf16 %v910_v3, %v902_v2 }
 0x1dc   : > { %v909_v13 = vld [vmem:[%s3399_s3 + $0xa70] sm:$0xff] }
 0x1dd   : > { %1876 = vmatpush1.bf16.msra.mxu0 %v1875_v23  ;;  %v1991_v23 = vpack.c.bf16 %v829_v17, %v821_v14  ;;  %v916_v14 = vld [vmem:[%s3399_s3 + $0xaa8] sm:$0xff]  ;;  %v918_v17 = vld [vmem:[%s3399_s3 + $0xab8] sm:$0xff] }
 0x1de   : > { %1972 = vmatpush1.bf16.msra.mxu1 %v1971_v24  ;;  %1878 = vmatprep.subr.bf16.mxu0 %v1877_v25  ;;  %v1897_v24 = vpack.c.bf16 %v844_v20, %v836_v19  ;;  %v835_v25 = vld [vmem:[%s3399_s3 + $0x820] sm:$0xff]  ;;  %v926_v19 = vld [vmem:[%s3399_s3 + $0xaf8] sm:$0xff] }
 0x1df   : > { %1974 = vmatprep.subr.bf16.mxu1 %v1973_v29  ;;  %v845_v29 = vld [vmem:[%s3399_s3 + $0x870] sm:$0xff]  ;;  %v1899_v33 = vpack.c.bf16 %v843_v18, %v835_v25  ;;  %v2013_v25 = vpack.c.bf16 %v926_v19, %v918_v17 }
 0x1e0   : > { %v925_v18 = vld [vmem:[%s3399_s3 + $0xaf0] sm:$0xff] }
 0x1e1   : > { %1880 = vmatpush1.bf16.msra.mxu0 %v1879_v34  ;;  %v1995_v34 = vpack.c.bf16 %v845_v29, %v837_v27  ;;  %v932_v27 = vld [vmem:[%s3399_s3 + $0xb28] sm:$0xff]  ;;  %v934_v29 = vld [vmem:[%s3399_s3 + $0xb38] sm:$0xff] }
 0x1e2   : > { %1976 = vmatpush1.bf16.msra.mxu1 %v1975_v35  ;;  %1882 = vmatprep.subr.bf16.mxu0 %v1881_v36  ;;  %v1901_v35 = vpack.c.bf16 %v860_v31, %v852_v30  ;;  %v851_v36 = vld [vmem:[%s3399_s3 + $0x8a0] sm:$0xff]  ;;  %v942_v30 = vld [vmem:[%s3399_s3 + $0xb78] sm:$0xff] }
 0x1e3   : > { %1978 = vmatprep.subr.bf16.mxu1 %v1977_v41  ;;  %v861_v41 = vld [vmem:[%s3399_s3 + $0x8f0] sm:$0xff]  ;;  %v1903_v46 = vpack.c.bf16 %v859_v37, %v851_v36  ;;  %v2017_v36 = vpack.c.bf16 %v942_v30, %v934_v29 }
 0x1e4   : > { %v941_v37 = vld [vmem:[%s3399_s3 + $0xb70] sm:$0xff] }
 0x1e5   : > { %1884 = vmatpush1.bf16.msra.mxu0 %v1883_v43  ;;  %v1999_v43 = vpack.c.bf16 %v861_v41, %v853_v39  ;;  %v948_v39 = vld [vmem:[%s3399_s3 + $0xba8] sm:$0xff]  ;;  %v950_v41 = vld [vmem:[%s3399_s3 + $0xbb8] sm:$0xff] }
 0x1e6   : > { %1980 = vmatpush1.bf16.msra.mxu1 %v1979_v48  ;;  %1886 = vmatprep.subr.bf16.mxu0 %v1885_v49  ;;  %v1905_v48 = vpack.c.bf16 %v876_v44, %v868_v42  ;;  %v867_v49 = vld [vmem:[%s3399_s3 + $0x920] sm:$0xff]  ;;  %v958_v42 = vld [vmem:[%s3399_s3 + $0xbf8] sm:$0xff] }
 0x1e7   : > { %1982 = vmatprep.subr.bf16.mxu1 %v1981_v53  ;;  %v884_v53 = vld [vmem:[%s3399_s3 + $0x9a8] sm:$0xff]  ;;  %v1907_v57 = vpack.c.bf16 %v875_v50, %v867_v49  ;;  %v949_v49 = vld [vmem:[%s3399_s3 + $0xbb0] sm:$0xff] }
 0x1e8   : > { %v957_v50 = vld [vmem:[%s3399_s3 + $0xbf0] sm:$0xff] }
 0x1e9   : > { %1888 = vmatpush1.bf16.msra.mxu0 %v1887_v59  ;;  %v1909_v59 = vpack.c.bf16 %v892_v54, %v884_v53 }
 0x1ea   : > { %1984 = vmatpush1.bf16.msra.mxu1 %v1983_v60  ;;  %1890 = vmatprep.subr.bf16.mxu0 %v1889_v61  ;;  %v883_v60 = vld [vmem:[%s3399_s3 + $0x9a0] sm:$0xff] }
 0x1eb   : > { %1986 = vmatprep.subr.bf16.mxu1 %v1985_v1  ;;  %v891_v61 = vld [vmem:[%s3399_s3 + $0x9e0] sm:$0xff]  ;;  %v908_v1 = vld [vmem:[%s3399_s3 + $0xa68] sm:$0xff] }
 0x1ec   : > { %v1911_v4 = vpack.c.bf16 %v891_v61, %v883_v60  ;;  %v1913_v7 = vpack.c.bf16 %v908_v1, %v900_v0 }
 0x1ed   : > { %1892 = vmatpush1.bf16.msra.mxu0 %v1891_v9  ;;  %v899_v9 = vld [vmem:[%s3399_s3 + $0xa20] sm:$0xff] }
 0x1ee   : > { %1988 = vmatpush1.bf16.msra.mxu1 %v1987_v10  ;;  %1894 = vmatprep.subr.bf16.mxu0 %v1893_v11  ;;  %v907_v10 = vld [vmem:[%s3399_s3 + $0xa60] sm:$0xff]  ;;  %v901_v11 = vld [vmem:[%s3399_s3 + $0xa30] sm:$0xff] }
 0x1ef   : > { %1990 = vmatprep.subr.bf16.mxu1 %v1989_v15  ;;  %v924_v15 = vld [vmem:[%s3399_s3 + $0xae8] sm:$0xff]  ;;  %v1915_v20 = vpack.c.bf16 %v907_v10, %v899_v9  ;;  %v2011_v21 = vpack.c.bf16 %v909_v13, %v901_v11 }
 0x1f0   : > { %v1917_v22 = vpack.c.bf16 %v924_v15, %v916_v14 }
 0x1f1   : > { %1896 = vmatpush1.bf16.msra.mxu0 %v1895_v16  ;;  %v915_v16 = vld [vmem:[%s3399_s3 + $0xaa0] sm:$0xff] }
 0x1f2   : > { %1992 = vmatpush1.bf16.msra.mxu1 %v1991_v23  ;;  %1898 = vmatprep.subr.bf16.mxu0 %v1897_v24  ;;  %v923_v23 = vld [vmem:[%s3399_s3 + $0xae0] sm:$0xff]  ;;  %v917_v24 = vld [vmem:[%s3399_s3 + $0xab0] sm:$0xff] }
 0x1f3   : > { %1994 = vmatprep.subr.bf16.mxu1 %v1993_v28  ;;  %v940_v28 = vld [vmem:[%s3399_s3 + $0xb68] sm:$0xff]  ;;  %v1919_v31 = vpack.c.bf16 %v923_v23, %v915_v16  ;;  %v2015_v38 = vpack.c.bf16 %v925_v18, %v917_v24 }
 0x1f4   : > { %1308 = vmatmul.mubr.f32.vlgmr.msra.gmra.mrb[4].mxu0 %v2642_v52  ;;  %v1921_v32 = vpack.c.bf16 %v940_v28, %v932_v27 }
 0x1f5   : > { %1450 = vmatmul.mubr.f32.vlgmr.msra.gmra.mrb[4].mxu1 %v2642_v52  ;;  %1900 = vmatpush1.bf16.msra.mxu0 %v1899_v33  ;;  %v2001_v52 = vpack.c.bf16 %v878_v45, %v870_v47  ;;  %v931_v33 = vld [vmem:[%s3399_s3 + $0xb20] sm:$0xff] }
 0x1f6   : > { %1996 = vmatpush1.bf16.msra.mxu1 %v1995_v34  ;;  %1902 = vmatprep.subr.bf16.mxu0 %v1901_v35  ;;  %v939_v34 = vld [vmem:[%s3399_s3 + $0xb60] sm:$0xff]  ;;  %v933_v35 = vld [vmem:[%s3399_s3 + $0xb30] sm:$0xff] }
 0x1f7   : > { %1998 = vmatprep.subr.bf16.mxu1 %v1997_v40  ;;  %1378 = vmatprep.mubr.f32.mxu0 %v2074_v6  ;;  %v956_v40 = vld [vmem:[%s3399_s3 + $0xbe8] sm:$0xff]  ;;  %v1923_v44 = vpack.c.bf16 %v939_v34, %v931_v33  ;;  %v2019_v47 = vpack.c.bf16 %v941_v37, %v933_v35 }
 0x1f8   : > { %1520 = vmatprep.mubr.f32.mxu1 %v2074_v6  ;;  %v2005_v6 = vpack.c.bf16 %v894_v56, %v886_v55  ;;  %v1925_v45 = vpack.c.bf16 %v956_v40, %v948_v39 }
 0x1f9   : > { %1904 = vmatpush1.bf16.msra.mxu0 %v1903_v46  ;;  %v947_v46 = vld [vmem:[%s3399_s3 + $0xba0] sm:$0xff] }
 0x1fa   : > { %2000 = vmatpush1.bf16.msra.mxu1 %v1999_v43  ;;  %1906 = vmatprep.subr.bf16.mxu0 %v1905_v48  ;;  %v955_v43 = vld [vmem:[%s3399_s3 + $0xbe0] sm:$0xff]  ;;  %v2021_v48 = vpack.c.bf16 %v958_v42, %v950_v41 }
 0x1fb   : > { %2002 = vmatprep.subr.bf16.mxu1 %v2001_v52  ;;  %v1927_v51 = vpack.c.bf16 %v955_v43, %v947_v46  ;;  %v2023_v52 = vpack.c.bf16 %v957_v50, %v949_v49 }
 0x1fd   : > { %1908 = vmatpush1.bf16.msra.mxu0 %v1907_v57 }
 0x1fe   : > { %2004 = vmatpush1.bf16.msra.mxu1 %v2003_v58  ;;  %1910 = vmatprep.subr.bf16.mxu0 %v1909_v59 }
 0x1ff   : > { %2006 = vmatprep.subr.bf16.mxu1 %v2005_v6 }
 0x201   : > { %1912 = vmatpush1.bf16.msra.mxu0 %v1911_v4 }
 0x202   : > { %2008 = vmatpush1.bf16.msra.mxu1 %v2007_v5  ;;  %1914 = vmatprep.subr.bf16.mxu0 %v1913_v7 }
 0x203   : > { %2010 = vmatprep.subr.bf16.mxu1 %v2009_v12 }
 0x205   : > { %1916 = vmatpush1.bf16.msra.mxu0 %v1915_v20 }
 0x206   : > { %2012 = vmatpush1.bf16.msra.mxu1 %v2011_v21  ;;  %1918 = vmatprep.subr.bf16.mxu0 %v1917_v22 }
 0x207   : > { %2014 = vmatprep.subr.bf16.mxu1 %v2013_v25 }
 0x209   : > { %1920 = vmatpush1.bf16.msra.mxu0 %v1919_v31 }
 0x20a   : > { %2016 = vmatpush1.bf16.msra.mxu1 %v2015_v38  ;;  %1922 = vmatprep.subr.bf16.mxu0 %v1921_v32 }
 0x20b   : > { %2018 = vmatprep.subr.bf16.mxu1 %v2017_v36 }
 0x20d   : > { %1924 = vmatpush1.bf16.msra.mxu0 %v1923_v44 }
 0x20e   : > { %2020 = vmatpush1.bf16.msra.mxu1 %v2019_v47  ;;  %1926 = vmatprep.subr.bf16.mxu0 %v1925_v45 }
 0x20f   : > { %2022 = vmatprep.subr.bf16.mxu1 %v2021_v48 }
 0x211   : > { %1928 = vmatpush1.bf16.msra.mxu0 %v1927_v51 }
 0x212   : > { %2024 = vmatpush1.bf16.msra.mxu1 %v2023_v52 }
 0x214   : > { %1379 = vmatmul.mubr.f32.vlgmr.msra.gmra.mrb[4].mxu0 %v2837_v26 }
 0x215   : > { %1521 = vmatmul.mubr.f32.vlgmr.msra.gmra.mrb[4].mxu1 %v2837_v26 }
 0x287   : > { %v1096_v8 = vpop.f32.mrb[2].mxu0  ;;  %v1238_v53 = vpop.f32.mrb[2].mxu1 }
 0x288   : > { %1527 = vst [vmem:[%s197_s10] sm:$0xff] %v1096_v8  ;;  %1529 = vst [vmem:[%s197_s10 + $0x10] sm:$0xff] %v1238_v53  ;;  %v1098_v54 = vpop.f32.mrb[3].mxu0  ;;  %v1240_v55 = vpop.f32.mrb[3].mxu1 }
 0x289   : > { %1528 = vst [vmem:[%s197_s10 + $0x8] sm:$0xff] %v1098_v54  ;;  %1530 = vst [vmem:[%s197_s10 + $0x18] sm:$0xff] %v1240_v55 }
 0x2e7   : > { %v1380_v56 = vpop.f32.mrb[4].mxu0 }
 0x2e8   : > { %1531 = vst [vmem:[%s197_s10 + $0x20] sm:$0xff] %v1380_v56  ;;  %v1522_v57 = vpop.f32.mrb[4].mxu1  ;;  %v1382_v58 = vpop.f32.mrb[5].mxu0 }
 0x2e9   : > { %1533 = vst [vmem:[%s197_s10 + $0x30] sm:$0xff] %v1522_v57  ;;  %1532 = vst [vmem:[%s197_s10 + $0x28] sm:$0xff] %v1382_v58  ;;  %v1524_v26 = vpop.f32.mrb[5].mxu1 }
 0x2ea   : > { %1534 = vst [vmem:[%s197_s10 + $0x38] sm:$0xff] %v1524_v26 }
 0x2eb PF: > { %s14_s15 = sadd.s32 1, %s2064_s15  }
 0x2ec   : > { %p11_p4 = scmp.ge.s32.totalorder %s14_s15, 4  }
 0x2ee   :  { %13 = sbr.rel (!%p11_p4) target bundleno = 1 (0x1), region = 66 }

</bundles_post_ra>
